<compile_context>
chip_gen: v5e
topology: v5e:2x2
jax: 0.10.0
libtpu: 0.0.40
codegen_flags: <defaults>
</compile_context>

<pallas_src>
import functools

import jax
import jax.numpy as jnp
from jax.experimental import pallas as pl
from jax.experimental.pallas import tpu as pltpu


def _round_up(a, m):
    return (a + m - 1) // m * m


def mlp_kernel(x_ref, w1_ref, b1_ref, w2_ref, b2_ref, w3_ref, b3_ref, o_ref):
    # x_ref : (TB, 1) f32      w1/b1/b2/b3 : (1, H) f32
    # w2/w3 : (H, H) bf16      o_ref : (TB, H) f32
    x = x_ref[...]                                          # (TB, 1)

    # Layer 1 has K=1 -> rank-1 outer product.  Keep it on the VPU as a
    # broadcast multiply instead of pushing a single column through the MXU.
    h1 = jnp.maximum(x * w1_ref[...] + b1_ref[...], 0.0)    # (TB, H) f32

    # Layers 2/3: bf16 MXU matmuls with f32 accumulation; f32 bias + ReLU.
    h2 = jnp.dot(h1.astype(jnp.bfloat16), w2_ref[...],
                 preferred_element_type=jnp.float32) + b2_ref[...]
    h2 = jnp.maximum(h2, 0.0)
    h3 = jnp.dot(h2.astype(jnp.bfloat16), w3_ref[...],
                 preferred_element_type=jnp.float32) + b3_ref[...]
    o_ref[...] = jnp.maximum(h3, 0.0).astype(o_ref.dtype)


@functools.partial(jax.jit, static_argnames=("out_dim", "tb"))
def model2_forward(x, w1, b1, w2, b2, w3, b3, *, out_dim, tb=1024):
    """x: (B, 1) f32.  Weights are (in, out); H (padded width) multiple of 128."""
    B = x.shape[0]
    H = b1.shape[-1]

    # Batch tile selection:
    #   * big by default (tb=1024) so MXU time per step >> per-step overhead,
    #   * never more than half the (128-rounded) batch, so the grid has >= 2
    #     "parallel" steps whenever possible -> both v7x TensorCores are used,
    #   * 128-aligned (MXU / lane alignment).
    half_b = _round_up(max(-(-B // 2), 8), 128)
    tb_eff = min(tb, half_b)
    B_pad = _round_up(B, tb_eff)
    if B_pad != B:
        x = jnp.pad(x, ((0, B_pad - B), (0, 0)))
    grid = (B_pad // tb_eff,)

    cost = pl.CostEstimate(
        flops=4 * B_pad * H * H + 2 * B_pad * H,
        transcendentals=0,
        bytes_accessed=4 * B_pad            # x
        + 2 * (2 * H * H)                   # bf16 W2, W3
        + 4 * 4 * H                         # w1, b1, b2, b3
        + 4 * B_pad * H,                    # output
    )

    y = pl.pallas_call(
        mlp_kernel,
        out_shape=jax.ShapeDtypeStruct((B_pad, H), jnp.float32),
        grid_spec=pltpu.PrefetchScalarGridSpec(
            num_scalar_prefetch=0,
            grid=grid,
            in_specs=[
                pl.BlockSpec((tb_eff, 1), lambda i: (i, 0)),   # x tile
                pl.BlockSpec((1, H), lambda i: (0, 0)),        # W1 (f32)
                pl.BlockSpec((1, H), lambda i: (0, 0)),        # b1
                pl.BlockSpec((H, H), lambda i: (0, 0)),        # W2 (bf16)
                pl.BlockSpec((1, H), lambda i: (0, 0)),        # b2
                pl.BlockSpec((H, H), lambda i: (0, 0)),        # W3 (bf16)
                pl.BlockSpec((1, H), lambda i: (0, 0)),        # b3
            ],
            out_specs=pl.BlockSpec((tb_eff, H), lambda i: (i, 0)),  # lane-dense
        ),
        compiler_params=pltpu.CompilerParams(
            dimension_semantics=("parallel",),
            vmem_limit_bytes=48 * 1024 * 1024,   # raise v5e's 16 MiB default;
                                                 # still inside v7x's 64 MiB
        ),
        cost_estimate=cost,
    )(x, w1, b1, w2, b2, w3, b3)

    return y[:B, :out_dim]


def init_params(key, hln):
    """nn.Linear-style init: U(-1/sqrt(fan_in), 1/sqrt(fan_in)).

    Weights returned as (in, out) so the kernel computes x @ W + b
    (same math as PyTorch's x @ W.T + b).
    """
    ks = jax.random.split(key, 6)

    def linear(kw, kb, fan_in, fan_out):
        bound = 1.0 / jnp.sqrt(jnp.float32(fan_in))
        w = jax.random.uniform(kw, (fan_in, fan_out), jnp.float32, -bound, bound)
        b = jax.random.uniform(kb, (1, fan_out), jnp.float32, -bound, bound)
        return w, b

    w1, b1 = linear(ks[0], ks[1], 1, hln)
    w2, b2 = linear(ks[2], ks[3], hln, hln)
    w3, b3 = linear(ks[4], ks[5], hln, hln)
    return w1, b1, w2, b2, w3, b3


def pad_params(params, hln, h_pad):
    """Zero-pad hln -> h_pad (lane-aligned); cast the (H,H) weights to bf16.

    Zero padding keeps the real `hln` output columns exactly equal to the
    unpadded computation.
    """
    w1, b1, w2, b2, w3, b3 = params
    pc = h_pad - hln

    def pad_cols(a):
        return jnp.pad(a, ((0, 0), (0, pc)))

    w1p = pad_cols(w1)
    b1p = pad_cols(b1)
    w2p = jnp.pad(w2, ((0, pc), (0, pc))).astype(jnp.bfloat16)
    b2p = pad_cols(b2)
    w3p = jnp.pad(w3, ((0, pc), (0, pc))).astype(jnp.bfloat16)
    b3p = pad_cols(b3)
    return w1p, b1p, w2p, b2p, w3p, b3p


def reference_forward(x, w1, b1, w2_bf, b2, w3_bf, b3, hln):
    """Pure-JAX reference mirroring the kernel's bf16-input / f32-accum math."""
    h1 = jnp.maximum(x * w1 + b1, 0.0)
    h2 = jnp.maximum(
        jnp.dot(h1.astype(jnp.bfloat16).astype(jnp.float32),
                w2_bf.astype(jnp.float32)) + b2, 0.0)
    h3 = jnp.maximum(
        jnp.dot(h2.astype(jnp.bfloat16).astype(jnp.float32),
                w3_bf.astype(jnp.float32)) + b3, 0.0)
    return h3[:, :hln]


if __name__ == "__main__":
    hln = 300        # matches the PyTorch module
    h_pad = 384      # 3 x 128 lanes; padded columns are exact zeros
    batch = 64       # small test batch; arbitrary sizes are handled via padding

    key = jax.random.PRNGKey(0)
    k_x, k_p = jax.random.split(key)
    x = jax.random.normal(k_x, (batch, 1), jnp.float32)

    raw_params = init_params(k_p, hln)
    params = pad_params(raw_params, hln, h_pad)

    y = model2_forward(x, *params, out_dim=hln)
    y = jax.block_until_ready(y)

    y_ref = reference_forward(x, *params, hln=hln)
    assert y.shape == (batch, hln), y.shape
    assert jnp.allclose(y, y_ref, atol=1e-3, rtol=1e-3), "mismatch vs reference"

    print("KERNEL_OK")
</pallas_src>

<mosaic_0001>
module attributes {stable_mosaic.version = 11 : i64} {
  func.func @mlp_kernel(%arg0: i32, %arg1: memref<128x1xf32, #tpu.memory_space<vmem>>, %arg2: memref<1x384xf32, #tpu.memory_space<vmem>>, %arg3: memref<1x384xf32, #tpu.memory_space<vmem>>, %arg4: memref<384x384xbf16, #tpu.memory_space<vmem>>, %arg5: memref<1x384xf32, #tpu.memory_space<vmem>>, %arg6: memref<384x384xbf16, #tpu.memory_space<vmem>>, %arg7: memref<1x384xf32, #tpu.memory_space<vmem>>, %arg8: memref<128x384xf32, #tpu.memory_space<vmem>>) attributes {dimension_semantics = [#tpu.dimension_semantics<parallel>], iteration_bounds = array<i64: 1>, scalar_prefetch = 0 : i64, scratch_operands = 0 : i64, tpu.core_type = #tpu.core_type<tc>, window_params = [{transform_indices = @transform_0, window_bounds = array<i64: 128, 1>}, {pipeline_mode = #tpu.pipeline_mode<synchronous>, transform_indices = @transform_1, window_bounds = array<i64: 1, 384>}, {pipeline_mode = #tpu.pipeline_mode<synchronous>, transform_indices = @transform_2, window_bounds = array<i64: 1, 384>}, {pipeline_mode = #tpu.pipeline_mode<synchronous>, transform_indices = @transform_3, window_bounds = array<i64: 384, 384>}, {pipeline_mode = #tpu.pipeline_mode<synchronous>, transform_indices = @transform_4, window_bounds = array<i64: 1, 384>}, {pipeline_mode = #tpu.pipeline_mode<synchronous>, transform_indices = @transform_5, window_bounds = array<i64: 384, 384>}, {pipeline_mode = #tpu.pipeline_mode<synchronous>, transform_indices = @transform_6, window_bounds = array<i64: 1, 384>}, {transform_indices = @transform_7, window_bounds = array<i64: 128, 384>}]} {
    %c0 = arith.constant 0 : index
    %c0_0 = arith.constant 0 : index
    %0 = vector.load %arg1[%c0, %c0_0] : memref<128x1xf32, #tpu.memory_space<vmem>>, vector<128x1xf32>
    %c0_1 = arith.constant 0 : index
    %c0_2 = arith.constant 0 : index
    %1 = vector.load %arg2[%c0_1, %c0_2] : memref<1x384xf32, #tpu.memory_space<vmem>>, vector<1x384xf32>
    %2 = vector.broadcast %0 : vector<128x1xf32> to vector<128x384xf32>
    %3 = vector.broadcast %1 : vector<1x384xf32> to vector<128x384xf32>
    %4 = arith.mulf %2, %3 : vector<128x384xf32>
    %c0_3 = arith.constant 0 : index
    %c0_4 = arith.constant 0 : index
    %5 = vector.load %arg3[%c0_3, %c0_4] : memref<1x384xf32, #tpu.memory_space<vmem>>, vector<1x384xf32>
    %6 = vector.broadcast %5 : vector<1x384xf32> to vector<128x384xf32>
    %7 = arith.addf %4, %6 : vector<128x384xf32>
    %cst = arith.constant 0.000000e+00 : f32
    %8 = vector.broadcast %cst : f32 to vector<128x384xf32>
    %9 = arith.maximumf %7, %8 : vector<128x384xf32>
    %10 = arith.truncf %9 : vector<128x384xf32> to vector<128x384xbf16>
    %c0_5 = arith.constant 0 : index
    %c0_6 = arith.constant 0 : index
    %11 = vector.load %arg4[%c0_5, %c0_6] : memref<384x384xbf16, #tpu.memory_space<vmem>>, vector<384x384xbf16>
    %cst_7 = arith.constant dense<0.000000e+00> : vector<128x384xf32>
    %12 = tpu.matmul %10, %11, %cst_7 {dimension_numbers = #tpu.dot_dimension_numbers<[1], [0], [0], [1], [0, 0, 1, 1], [], []>} : vector<128x384xbf16>, vector<384x384xbf16>, vector<128x384xf32> -> vector<128x384xf32>
    %c0_8 = arith.constant 0 : index
    %c0_9 = arith.constant 0 : index
    %13 = vector.load %arg5[%c0_8, %c0_9] : memref<1x384xf32, #tpu.memory_space<vmem>>, vector<1x384xf32>
    %14 = vector.broadcast %13 : vector<1x384xf32> to vector<128x384xf32>
    %15 = arith.addf %12, %14 : vector<128x384xf32>
    %cst_10 = arith.constant 0.000000e+00 : f32
    %16 = vector.broadcast %cst_10 : f32 to vector<128x384xf32>
    %17 = arith.maximumf %15, %16 : vector<128x384xf32>
    %18 = arith.truncf %17 : vector<128x384xf32> to vector<128x384xbf16>
    %c0_11 = arith.constant 0 : index
    %c0_12 = arith.constant 0 : index
    %19 = vector.load %arg6[%c0_11, %c0_12] : memref<384x384xbf16, #tpu.memory_space<vmem>>, vector<384x384xbf16>
    %cst_13 = arith.constant dense<0.000000e+00> : vector<128x384xf32>
    %20 = tpu.matmul %18, %19, %cst_13 {dimension_numbers = #tpu.dot_dimension_numbers<[1], [0], [0], [1], [0, 0, 1, 1], [], []>} : vector<128x384xbf16>, vector<384x384xbf16>, vector<128x384xf32> -> vector<128x384xf32>
    %c0_14 = arith.constant 0 : index
    %c0_15 = arith.constant 0 : index
    %21 = vector.load %arg7[%c0_14, %c0_15] : memref<1x384xf32, #tpu.memory_space<vmem>>, vector<1x384xf32>
    %22 = vector.broadcast %21 : vector<1x384xf32> to vector<128x384xf32>
    %23 = arith.addf %20, %22 : vector<128x384xf32>
    %cst_16 = arith.constant 0.000000e+00 : f32
    %24 = vector.broadcast %cst_16 : f32 to vector<128x384xf32>
    %25 = arith.maximumf %23, %24 : vector<128x384xf32>
    %c0_17 = arith.constant 0 : index
    %c0_18 = arith.constant 0 : index
    %26 = vector.load %arg8[%c0_17, %c0_18] : memref<128x384xf32, #tpu.memory_space<vmem>>, vector<128x384xf32>
    tpu.vector_store %arg8[%c0_17, %c0_18], %25 {strides = array<i32>} : memref<128x384xf32, #tpu.memory_space<vmem>>, vector<128x384xf32>,
    return
  }
  func.func @transform_0(%arg0: i32) -> (i32, i32) {
    %c0_i32 = arith.constant 0 : i32
    %c0_i32_0 = arith.constant 0 : i32
    return %arg0, %c0_i32 : i32, i32
  }
  func.func @transform_1(%arg0: i32) -> (i32, i32) {
    %c0_i32 = arith.constant 0 : i32
    %c0_i32_0 = arith.constant 0 : i32
    %c0_i32_1 = arith.constant 0 : i32
    return %c0_i32, %c0_i32_0 : i32, i32
  }
  func.func @transform_2(%arg0: i32) -> (i32, i32) {
    %c0_i32 = arith.constant 0 : i32
    %c0_i32_0 = arith.constant 0 : i32
    %c0_i32_1 = arith.constant 0 : i32
    return %c0_i32, %c0_i32_0 : i32, i32
  }
  func.func @transform_3(%arg0: i32) -> (i32, i32) {
    %c0_i32 = arith.constant 0 : i32
    %c0_i32_0 = arith.constant 0 : i32
    %c0_i32_1 = arith.constant 0 : i32
    return %c0_i32, %c0_i32_0 : i32, i32
  }
  func.func @transform_4(%arg0: i32) -> (i32, i32) {
    %c0_i32 = arith.constant 0 : i32
    %c0_i32_0 = arith.constant 0 : i32
    %c0_i32_1 = arith.constant 0 : i32
    return %c0_i32, %c0_i32_0 : i32, i32
  }
  func.func @transform_5(%arg0: i32) -> (i32, i32) {
    %c0_i32 = arith.constant 0 : i32
    %c0_i32_0 = arith.constant 0 : i32
    %c0_i32_1 = arith.constant 0 : i32
    return %c0_i32, %c0_i32_0 : i32, i32
  }
  func.func @transform_6(%arg0: i32) -> (i32, i32) {
    %c0_i32 = arith.constant 0 : i32
    %c0_i32_0 = arith.constant 0 : i32
    %c0_i32_1 = arith.constant 0 : i32
    return %c0_i32, %c0_i32_0 : i32, i32
  }
  func.func @transform_7(%arg0: i32) -> (i32, i32) {
    %c0_i32 = arith.constant 0 : i32
    %c0_i32_0 = arith.constant 0 : i32
    return %arg0, %c0_i32 : i32, i32
  }
}

</mosaic_0001>

<bundles_post_ra>
// kernel: model2_forward.1
= control target key start
LH: loop header
LB: loop body
LE: loop exit
PB: predicated region body
PF: predicated region fallthrough
CT: control target
= control target key end

     0   :  { %12 = vsyncpa [#allocation3], 0  ;;  %s4145_s0 = inlined_call_operand.vmem [shape: f32[128,1], index: 0, kind: input, shape index: {}]   ;;  %s4146_s1 = inlined_call_operand.vmem [shape: f32[1,384], index: 1, kind: input, shape index: {}]   ;;  %s4147_s2 = inlined_call_operand.vmem [shape: f32[1,384], index: 2, kind: input, shape index: {}]   ;;  %s4148_s3 = inlined_call_operand.hbm [shape: bf16[384,384], index: 3, kind: input, shape index: {}]   ;;  %s4149_s4 = inlined_call_operand.vmem [shape: f32[1,384], index: 4, kind: input, shape index: {}]   ;;  %s4150_s5 = inlined_call_operand.hbm [shape: bf16[384,384], index: 5, kind: input, shape index: {}]   ;;  %s4151_s6 = inlined_call_operand.vmem [shape: f32[1,384], index: 6, kind: input, shape index: {}]   ;;  %s4152_s7 = inlined_call_operand.vmem [shape: f32[128,384], index: 7, kind: output, shape index: {}]  }
   0x1   :  { %s24_s26 = sshll.u32 %s4148_s3, 4  ;;  %s25_s26 = int_to_ptr.hbm [resolvable:$true] %s24_s26 }
   0x2   :  { %13 = vsyncpa [#allocation5], 0  ;;  %s3166_s27 = smov [#allocation2]   ;;  %s39_s8 = sshll.u32 %s4150_s5, 4  ;;  %s40_s8 = int_to_ptr.hbm [resolvable:$true] %s39_s8 }
   0x3   :  { %s26_s28 = sshll.u32 %s3166_s27, 4  ;;  %s3167_s9 = smov 192   ;;  %s27_s28 = int_to_ptr.vmem [resolvable:$true] %s26_s28 }
   0x4   :  { %s3168_s10 = smov 12   ;;  %s3169_s11 = smov [#allocation4]  }
   0x5   :  { %32 = dma.hbm_to_vmem [thread:$0]  %s25_s26, 9216, %s27_s28, [#allocation3], %s3167_s9, %s3167_s9, %s3168_s10  }
   0x6   :  { %s41_s12 = sshll.u32 %s3169_s11, 4  ;;  %s42_s12 = int_to_ptr.vmem [resolvable:$true] %s41_s12 }
   0x7   :  { %47 = dma.hbm_to_vmem [thread:$0]  %s40_s8, 9216, %s42_s12, [#allocation5], %s3167_s9, %s3167_s9, %s3168_s10  }
   0x8   :  { %3162 = dma.done.wait [#allocation3], 9216  }
   0x9   :  { %3163 = vsyncadd [#allocation3], 4294958080 }
   0xa   :  { %3164 = dma.done.wait [#allocation5], 9216  }
   0xb   :  { %3165 = vsyncadd [#allocation5], 4294958080  ;;  %v3170_v0 = vmov 0   ;;  %v66_v1 = vld [vmem:[%s4145_s0 + $0x40] sm:$0xff]  ;;  %v68_v3 = vld [vmem:[%s4145_s0 + $0x50] sm:$0xff] }
   0xc   :  { %3112 = vset.pattern.permute.xlu1 %v3170_v0  ;;  %3111 = vset.pattern.permute.xlu0 %v3170_v0  ;;  %v58_v2 = vld [vmem:[%s4145_s0] sm:$0xff]  ;;  %v67_v4 = vld [vmem:[%s4145_s0 + $0x48] sm:$0xff]  ;;  %v69_v6 = vld [vmem:[%s4145_s0 + $0x58] sm:$0xff] }
   0xd   :  { %3113 = vset.pattern.permute.xlu2 %v3170_v0  ;;  %117 = vperm.xlu0 %3111, %v66_v1   ;;  %v59_v5 = vld [vmem:[%s4145_s0 + $0x8] sm:$0xff]  ;;  %v60_v7 = vld [vmem:[%s4145_s0 + $0x10] sm:$0xff]  ;;  %v61_v8 = vld [vmem:[%s4145_s0 + $0x18] sm:$0xff] }
   0xe   :  { %77 = vperm.xlu1 %3112, %v58_v2   ;;  %127 = vperm.xlu2 %3113, %v68_v3   ;;  %v70_v9 = vld [vmem:[%s4145_s0 + $0x60] sm:$0xff]  ;;  %v71_v10 = vld [vmem:[%s4145_s0 + $0x68] sm:$0xff]  ;;  %v72_v13 = vld [vmem:[%s4145_s0 + $0x70] sm:$0xff] }
   0xf   :  { %v62_v11 = vld [vmem:[%s4145_s0 + $0x20] sm:$0xff]  ;;  %v63_v12 = vld [vmem:[%s4145_s0 + $0x28] sm:$0xff]  ;;  %v73_v14 = vld [vmem:[%s4145_s0 + $0x78] sm:$0xff] }
  0x10   :  { %v64_v15 = vld [vmem:[%s4145_s0 + $0x30] sm:$0xff]  ;;  %v65_v16 = vld [vmem:[%s4145_s0 + $0x38] sm:$0xff]  ;;  %v2456_v17 = vld [vmem:[#allocation2 + $0xa8] sm:$0xf] }
  0x11   :  { %v2968_v18 = vld [vmem:[#allocation2 + $0xb0] sm:$0xf0]  ;;  %v2552_v19 = vld [vmem:[#allocation2 + $0x168] sm:$0xf]  ;;  %v2444_v22 = vld [vmem:[#allocation2 + $0x90] sm:$0xf] }
  0x12   :  { %v2457_v20 = vor.u32 %v2968_v18, %v2456_v17  ;;  %v2992_v21 = vld [vmem:[#allocation2 + $0x170] sm:$0xf0]  ;;  %v2965_v23 = vld [vmem:[#allocation2 + $0x98] sm:$0xf0]  ;;  %v2540_v25 = vld [vmem:[#allocation2 + $0x150] sm:$0xf] }
  0x13   :  { %v2553_v24 = vor.u32 %v2992_v21, %v2552_v19  ;;  %v2989_v26 = vld [vmem:[#allocation2 + $0x158] sm:$0xf0]  ;;  %v2445_v27 = vor.u32 %v2965_v23, %v2444_v22  ;;  %v2432_v29 = vld [vmem:[#allocation2 + $0x78] sm:$0xf]  ;;  %v2962_v30 = vld [vmem:[#allocation2 + $0x80] sm:$0xf0] }
  0x14   :  { %826 = vmatpush.bf16.msra.mxu0 %v2457_v20  ;;  %3090 = vmatpush.bf16.msra.mxu2 %v2457_v20  ;;  %v2541_v28 = vor.u32 %v2989_v26, %v2540_v25  ;;  %v2528_v31 = vld [vmem:[#allocation2 + $0x138] sm:$0xf]  ;;  %v2433_v32 = vor.u32 %v2962_v30, %v2432_v29  ;;  %v2986_v33 = vld [vmem:[#allocation2 + $0x140] sm:$0xf0]  ;;  %v2420_v34 = vld [vmem:[#allocation2 + $0x60] sm:$0xf] }
  0x15   :  { %122 = vperm.xlu0 %3111, %v67_v4   ;;  %875 = vmatpush.bf16.msra.mxu1 %v2553_v24  ;;  %v2959_v35 = vld [vmem:[#allocation2 + $0x68] sm:$0xf0]  ;;  %v2529_v36 = vor.u32 %v2986_v33, %v2528_v31  ;;  %v2516_v37 = vld [vmem:[#allocation2 + $0x120] sm:$0xf]  ;;  %v2408_v41 = vld [vmem:[#allocation2 + $0x48] sm:$0xf] }
  0x16   :  { %82 = vperm.xlu1 %3112, %v59_v5   ;;  %132 = vperm.xlu2 %3113, %v69_v6   ;;  %v2983_v38 = vld [vmem:[#allocation2 + $0x128] sm:$0xf0]  ;;  %v2421_v39 = vor.u32 %v2959_v35, %v2420_v34  ;;  %v2956_v42 = vld [vmem:[#allocation2 + $0x50] sm:$0xf0]  ;;  %v2504_v43 = vld [vmem:[#allocation2 + $0x108] sm:$0xf] }
  0x17   :  { %3098 = vmatpush.bf16.msra.mxu3 %v2553_v24  ;;  %v2517_v40 = vor.u32 %v2983_v38, %v2516_v37  ;;  %v2409_v44 = vor.u32 %v2956_v42, %v2408_v41  ;;  %v2980_v45 = vld [vmem:[#allocation2 + $0x110] sm:$0xf0]  ;;  %v2396_v47 = vld [vmem:[#allocation2 + $0x30] sm:$0xf]  ;;  %v2953_v48 = vld [vmem:[#allocation2 + $0x38] sm:$0xf0] }
  0x18   :  { %827 = vmatpush.bf16.msra.mxu0 %v2445_v27  ;;  %3091 = vmatpush.bf16.msra.mxu2 %v2445_v27  ;;  %v2505_v46 = vor.u32 %v2980_v45, %v2504_v43  ;;  %v2492_v49 = vld [vmem:[#allocation2 + $0xf0] sm:$0xf]  ;;  %v74_v50 = vld [vmem:[%s4146_s1] sm:$0x7]  ;;  %v2397_v51 = vor.u32 %v2953_v48, %v2396_v47  ;;  %v2977_v52 = vld [vmem:[#allocation2 + $0xf8] sm:$0xf0] }
  0x19   :  { %876 = vmatpush.bf16.msra.mxu1 %v2541_v28  ;;  %v2493_v53 = vor.u32 %v2977_v52, %v2492_v49  ;;  %v3268_v54 = vperm.slane %v74_v50, 2  ;;  %v3273_v55 = vld [vmem:[%s4147_s2] sm:$0x7]  ;;  %v2384_v56 = vld [vmem:[#allocation2 + $0x18] sm:$0xf]  ;;  %v3299_v27 = vperm.slane %v74_v50, 0 }
  0x1a   :  { %v2950_v57 = vld [vmem:[#allocation2 + $0x20] sm:$0xf0]  ;;  %v2480_v58 = vld [vmem:[#allocation2 + $0xd8] sm:$0xf]  ;;  %v3278_v62 = vperm.slane %v3273_v55, 2  ;;  %v3301_v30 = vperm.slane %v74_v50, 1 }
  0x1b   :  { %3099 = vmatpush.bf16.msra.mxu3 %v2541_v28  ;;  %v2385_v60 = vor.u32 %v2950_v57, %v2384_v56  ;;  %v2974_v61 = vld [vmem:[#allocation2 + $0xe0] sm:$0xf0]  ;;  %v2372_v2 = vld [vmem:[#allocation2] sm:$0xf]  ;;  %v2947_v3 = vld [vmem:[#allocation2 + $0x8] sm:$0xf0] }
  0x1c   :  { %828 = vmatpush.bf16.msra.mxu0 %v2433_v32  ;;  %3092 = vmatpush.bf16.msra.mxu2 %v2433_v32  ;;  %v2481_v0 = vor.u32 %v2974_v61, %v2480_v58  ;;  %v2468_v4 = vld [vmem:[#allocation2 + $0xc0] sm:$0xf]  ;;  %v2373_v5 = vor.u32 %v2947_v3, %v2372_v2  ;;  %v2971_v6 = vld [vmem:[#allocation2 + $0xc8] sm:$0xf0]  ;;  %v2636_v20 = vld [vmem:[#allocation2 + $0x210] sm:$0xf] }
  0x1d   :  { %87 = vperm.xlu0 %3111, %v60_v7   ;;  %877 = vmatpush.bf16.msra.mxu1 %v2529_v36  ;;  %v2469_v7 = vor.u32 %v2971_v6, %v2468_v4  ;;  %v3013_v21 = vld [vmem:[#allocation2 + $0x218] sm:$0xf0]  ;;  %v2964_v22 = vld [vmem:[#allocation2 + $0x94] sm:$0xf]  ;;  %v2446_v24 = vld [vmem:[#allocation2 + $0x9c] sm:$0xf0] }
  0x1e   :  { %92 = vperm.xlu1 %3112, %v61_v8   ;;  %137 = vperm.xlu2 %3113, %v70_v9   ;;  %v2637_v23 = vor.u32 %v3013_v21, %v2636_v20  ;;  %v2991_v25 = vld [vmem:[#allocation2 + $0x16c] sm:$0xf]  ;;  %v2554_v26 = vld [vmem:[#allocation2 + $0x174] sm:$0xf0]  ;;  %v2449_v28 = vor.u32 %v2964_v22, %v2446_v24  ;;  %v3307_v35 = vperm.slane %v3273_v55, 0 }
  0x1f   :  { %3100 = vmatpush.bf16.msra.mxu3 %v2529_v36  ;;  %v2557_v29 = vor.u32 %v2991_v25, %v2554_v26  ;;  %v2624_v48 = vld [vmem:[#allocation2 + $0x1f8] sm:$0xf]  ;;  %v3010_v49 = vld [vmem:[#allocation2 + $0x200] sm:$0xf0]  ;;  %v2434_v52 = vld [vmem:[#allocation2 + $0x84] sm:$0xf0] }
  0x20   :  { %829 = vmatpush.bf16.msra.mxu0 %v2421_v39  ;;  %3093 = vmatpush.bf16.msra.mxu2 %v2421_v39  ;;  %v3313_v39 = vperm.slane %v3273_v55, 1  ;;  %v2625_v50 = vor.u32 %v3010_v49, %v2624_v48  ;;  %v2612_v25 = vld [vmem:[#allocation2 + $0x1e0] sm:$0xf] }
  0x21   :  { %878 = vmatpush.bf16.msra.mxu1 %v2517_v40 }
  0x23   :  { %3101 = vmatpush.bf16.msra.mxu3 %v2517_v40 }
  0x24   :  { %830 = vmatpush.bf16.msra.mxu0 %v2409_v44  ;;  %3094 = vmatpush.bf16.msra.mxu2 %v2409_v44 }
  0x25   :  { %142 = vperm.xlu0 %3111, %v71_v10   ;;  %879 = vmatpush.bf16.msra.mxu1 %v2505_v46 }
  0x26   :  { %97 = vperm.xlu1 %3112, %v62_v11   ;;  %102 = vperm.xlu2 %3113, %v63_v12   ;;  %v2648_v11 = vld [vmem:[#allocation2 + $0x228] sm:$0xf]  ;;  %v3016_v12 = vld [vmem:[#allocation2 + $0x230] sm:$0xf0] }
  0x27   :  { %3102 = vmatpush.bf16.msra.mxu3 %v2505_v46 }
  0x28   :  { %831 = vmatpush.bf16.msra.mxu0 %v2397_v51  ;;  %3095 = vmatpush.bf16.msra.mxu2 %v2397_v51  ;;  %v2961_v51 = vld [vmem:[#allocation2 + $0x7c] sm:$0xf] }
  0x29   :  { %880 = vmatpush.bf16.msra.mxu1 %v2493_v53  ;;  %v2437_v58 = vor.u32 %v2961_v51, %v2434_v52 }
  0x2b   :  { %3103 = vmatpush.bf16.msra.mxu3 %v2493_v53 }
  0x2c   :  { %832 = vmatpush.bf16.msra.mxu0 %v2385_v60  ;;  %3096 = vmatpush.bf16.msra.mxu2 %v2385_v60 }
  0x2d   :  { %147 = vperm.xlu0 %3111, %v72_v13   ;;  %881 = vmatpush.bf16.msra.mxu1 %v2481_v0  ;;  %v2967_v13 = vld [vmem:[#allocation2 + $0xac] sm:$0xf] }
  0x2e   :  { %152 = vperm.xlu1 %3112, %v73_v14   ;;  %107 = vperm.xlu2 %3113, %v64_v15   ;;  %v2649_v14 = vor.u32 %v3016_v12, %v2648_v11  ;;  %v2458_v15 = vld [vmem:[#allocation2 + $0xb4] sm:$0xf0] }
  0x2f   :  { %3104 = vmatpush.bf16.msra.mxu3 %v2481_v0 }
  0x30   :  { %833 = vmatpush.bf16.msra.mxu0 %v2373_v5  ;;  %3097 = vmatpush.bf16.msra.mxu2 %v2373_v5 }
  0x31   :  { %882 = vmatpush.bf16.msra.mxu1 %v2469_v7 }
  0x33   :  { %3105 = vmatpush.bf16.msra.mxu3 %v2469_v7 }
  0x34   :  { %924 = vmatpush.bf16.msrb.mxu2 %v2649_v14  ;;  %1022 = vmatpush.bf16.msrb.mxu0 %v2557_v29  ;;  %v2542_v14 = vld [vmem:[#allocation2 + $0x15c] sm:$0xf0] }
  0x35   :  { %112 = vperm.xlu0 %3111, %v65_v16   ;;  %v2461_v16 = vor.u32 %v2967_v13, %v2458_v15  ;;  %v2988_v13 = vld [vmem:[#allocation2 + $0x154] sm:$0xf] }
  0x36   :  { %v2545_v29 = vor.u32 %v2988_v13, %v2542_v14  ;;  %v2410_v13 = vld [vmem:[#allocation2 + $0x54] sm:$0xf0]  ;;  %v2982_v14 = vld [vmem:[#allocation2 + $0x124] sm:$0xf] }
  0x37   :  { %973 = vmatpush.bf16.msrb.mxu3 %v2461_v16 }
  0x38   :  { %925 = vmatpush.bf16.msrb.mxu2 %v2637_v23  ;;  %1023 = vmatpush.bf16.msrb.mxu0 %v2545_v29 }
  0x3b   :  { %974 = vmatpush.bf16.msrb.mxu3 %v2449_v28 }
  0x3c   :  { %926 = vmatpush.bf16.msrb.mxu2 %v2625_v50  ;;  %v2530_v50 = vld [vmem:[#allocation2 + $0x144] sm:$0xf0] }
  0x3f   :  { %975 = vmatpush.bf16.msrb.mxu3 %v2437_v58 }
  0x68   :  { %v3275_v59 = vpop.permute.xlu2 %127 }
  0x69   :  { %v194_v63 = vmul.f32 %v3268_v54, %v3275_v59 }
  0x6b   :  { %v3283_v1 = vadd.f32 %v3278_v62, %v194_v63 }
  0x70   :  { %v3285_v8 = vpop.permute.xlu2 %132 }
  0x71   :  { %v197_v9 = vmul.f32 %v3268_v54, %v3285_v8  ;;  %v195_v51 = vmul.f32 %v3299_v27, %v3285_v8 }
  0x73   :  { %v3290_v10 = vadd.f32 %v3278_v62, %v197_v9 }
  0x78   :  { %v3292_v17 = vpop.permute.xlu2 %137 }
  0x79   :  { %v200_v18 = vmul.f32 %v3268_v54, %v3292_v17 }
  0x7b   :  { %v3297_v19 = vadd.f32 %v3278_v62, %v200_v18 }
  0x7f   :  { %v118_v31 = vpop.permute.xlu0 %117 }
  0x80   :  { %v78_v32 = vpop.permute.xlu1 %77  ;;  %v188_v33 = vmul.f32 %v3268_v54, %v118_v31  ;;  %v3304_v34 = vpop.permute.xlu2 %102  ;;  %v186_v36 = vmul.f32 %v3299_v27, %v118_v31  ;;  %v187_v41 = vmul.f32 %v3301_v30, %v118_v31  ;;  %v3007_v31 = vld [vmem:[#allocation2 + $0x1e8] sm:$0xf0] }
  0x81   :  { %v162_v37 = vmul.f32 %v3299_v27, %v78_v32  ;;  %v164_v38 = vmul.f32 %v3268_v54, %v78_v32  ;;  %v163_v42 = vmul.f32 %v3301_v30, %v78_v32  ;;  %v179_v44 = vmul.f32 %v3268_v54, %v3304_v34  ;;  %v2958_v32 = vld [vmem:[#allocation2 + $0x64] sm:$0xf] }
  0x82   :  { %v3316_v40 = vadd.f32 %v3278_v62, %v188_v33  ;;  %v242_v45 = vadd.f32 %v3307_v35, %v186_v36  ;;  %v243_v53 = vadd.f32 %v3313_v39, %v187_v41  ;;  %v2985_v41 = vld [vmem:[#allocation2 + $0x13c] sm:$0xf]  ;;  %v2613_v48 = vor.u32 %v3007_v31, %v2612_v25  ;;  %v2638_v25 = vld [vmem:[#allocation2 + $0x21c] sm:$0xf0] }
  0x83   :  { %v3321_v43 = vadd.f32 %v3278_v62, %v164_v38  ;;  %v218_v46 = vadd.f32 %v3307_v35, %v162_v37  ;;  %v3328_v47 = vadd.f32 %v3278_v62, %v179_v44  ;;  %v219_v55 = vadd.f32 %v3313_v39, %v163_v42  ;;  %v2422_v38 = vld [vmem:[#allocation2 + $0x6c] sm:$0xf0] }
  0x84   :  { %v290_v6 = vmax.f32 %v242_v45, 0.0  ;;  %v291_v23 = vmax.f32 %v243_v53, 0.0  ;;  %v192_v42 = vmul.f32 %v3299_v27, %v3275_v59  ;;  %v2425_v49 = vor.u32 %v2958_v32, %v2422_v38  ;;  %927 = vmatpush.bf16.msrb.mxu2 %v2613_v48 }
  0x85   :  { %v266_v5 = vmax.f32 %v218_v46, 0.0  ;;  %v267_v20 = vmax.f32 %v219_v55, 0.0  ;;  %v268_v55 = vmax.f32 %v3321_v43, 0.0  ;;  %v2533_v58 = vor.u32 %v2985_v41, %v2530_v50  ;;  %v3001_v41 = vld [vmem:[#allocation2 + $0x1b8] sm:$0xf0] }
  0x86   :  { %976 = vmatpush.bf16.msrb.mxu3 %v2425_v49 }
  0x87   :  { %v123_v56 = vpop.permute.xlu0 %122  ;;  %1024 = vmatpush.bf16.msrb.mxu0 %v2533_v58 }
  0x88   :  { %v83_v57 = vpop.permute.xlu1 %82  ;;  %v189_v60 = vmul.f32 %v3299_v27, %v123_v56  ;;  %v190_v61 = vmul.f32 %v3301_v30, %v123_v56  ;;  %v191_v63 = vmul.f32 %v3268_v54, %v123_v56  ;;  %v3336_v2 = vpop.permute.xlu2 %107 }
  0x89   :  { %v165_v0 = vmul.f32 %v3299_v27, %v83_v57  ;;  %v166_v3 = vmul.f32 %v3301_v30, %v83_v57  ;;  %v167_v4 = vmul.f32 %v3268_v54, %v83_v57  ;;  %v182_v18 = vmul.f32 %v3268_v54, %v3336_v2 }
  0x8a   :  { %v245_v7 = vadd.f32 %v3307_v35, %v189_v60  ;;  %v246_v9 = vadd.f32 %v3313_v39, %v190_v61  ;;  %v3343_v11 = vadd.f32 %v3278_v62, %v191_v63  ;;  %v3015_v60 = vld [vmem:[#allocation2 + $0x22c] sm:$0xf]  ;;  %v2650_v61 = vld [vmem:[#allocation2 + $0x234] sm:$0xf0] }
  0x8b   :  { %v221_v12 = vadd.f32 %v3307_v35, %v165_v0  ;;  %v222_v15 = vadd.f32 %v3313_v39, %v166_v3  ;;  %v3348_v16 = vadd.f32 %v3278_v62, %v167_v4  ;;  %v3353_v26 = vadd.f32 %v3278_v62, %v182_v18 }
  0x8c   :  { %v293_v22 = vmax.f32 %v245_v7, 0.0  ;;  %v294_v24 = vmax.f32 %v246_v9, 0.0  ;;  %v193_v0 = vmul.f32 %v3301_v30, %v3275_v59  ;;  %v2955_v7 = vld [vmem:[#allocation2 + $0x4c] sm:$0xf]  ;;  %v196_v9 = vmul.f32 %v3301_v30, %v3285_v8 }
  0x8d   :  { %v269_v21 = vmax.f32 %v221_v12, 0.0  ;;  %v270_v28 = vmax.f32 %v222_v15, 0.0  ;;  %v271_v63 = vmax.f32 %v3348_v16, 0.0  ;;  %v2518_v15 = vld [vmem:[#allocation2 + $0x12c] sm:$0xf0]  ;;  %v248_v16 = vadd.f32 %v3307_v35, %v192_v42 }
  0x8e   :  { %v3357_v36 = vpack.c.bf16 %v293_v22, %v290_v6  ;;  %v3359_v37 = vpack.c.bf16 %v294_v24, %v291_v23  ;;  %v3004_v6 = vld [vmem:[#allocation2 + $0x1d0] sm:$0xf0]  ;;  %v251_v18 = vadd.f32 %v3307_v35, %v195_v51  ;;  %v2413_v23 = vor.u32 %v2955_v7, %v2410_v13  ;;  %v3009_v42 = vld [vmem:[#allocation2 + $0x1fc] sm:$0xf] }
  0x8f   :  { %v3355_v33 = vpack.c.bf16 %v269_v21, %v266_v5  ;;  %v88_v44 = vpop.permute.xlu0 %87  ;;  %v3363_v46 = vpack.c.bf16 %v270_v28, %v267_v20  ;;  %v2600_v5 = vld [vmem:[#allocation2 + $0x1c8] sm:$0xf]  ;;  %v2653_v21 = vor.u32 %v3015_v60, %v2650_v61  ;;  %v3012_v22 = vld [vmem:[#allocation2 + $0x214] sm:$0xf]  ;;  %v2521_v24 = vor.u32 %v2982_v14, %v2518_v15  ;;  %v2588_v28 = vld [vmem:[#allocation2 + $0x1b0] sm:$0xf] }
  0x90   :  { %v93_v45 = vpop.permute.xlu1 %92  ;;  %v168_v52 = vmul.f32 %v3299_v27, %v88_v44  ;;  %v170_v53 = vmul.f32 %v3268_v54, %v88_v44  ;;  %854 = vmatmul.bf16.vlgmr.msra.gmra.mxu2 %v3357_v36  ;;  %v169_v3 = vmul.f32 %v3301_v30, %v88_v44  ;;  %903 = vmatmul.bf16.vlgmr.msra.gmra.mxu3 %v3359_v37  ;;  %v2626_v44 = vld [vmem:[#allocation2 + $0x204] sm:$0xf0]  ;;  %v296_v58 = vmax.f32 %v248_v16, 0.0  ;;  %v2506_v61 = vld [vmem:[#allocation2 + $0x114] sm:$0xf0] }
  0x91   :  { %834 = vmatmul.bf16.vlgmr.msra.gmra.mxu0 %v3355_v33  ;;  %v171_v56 = vmul.f32 %v3299_v27, %v93_v45  ;;  %v173_v57 = vmul.f32 %v3268_v54, %v93_v45  ;;  %883 = vmatmul.bf16.vlgmr.msra.gmra.mxu1 %v3363_v46  ;;  %v172_v4 = vmul.f32 %v3301_v30, %v93_v45  ;;  %v299_v60 = vmax.f32 %v251_v18, 0.0  ;;  %v3006_v18 = vld [vmem:[#allocation2 + $0x1e4] sm:$0xf] }
  0x92   :  { %v3380_v43 = vadd.f32 %v3278_v62, %v170_v53  ;;  %v2601_v59 = vor.u32 %v3004_v6, %v2600_v5  ;;  %v224_v20 = vadd.f32 %v3307_v35, %v168_v52  ;;  %v3393_v29 = vpack.c.bf16 %v271_v63, %v268_v55  ;;  %1071 = vmatpush.bf16.msrb.mxu1 %v2653_v21  ;;  %v2952_v52 = vld [vmem:[#allocation2 + $0x34] sm:$0xf]  ;;  %v2398_v53 = vld [vmem:[#allocation2 + $0x3c] sm:$0xf0]  ;;  %v2979_v55 = vld [vmem:[#allocation2 + $0x10c] sm:$0xf] }
  0x93   :  { %v3387_v12 = vadd.f32 %v3278_v62, %v173_v57  ;;  %v227_v8 = vadd.f32 %v3307_v35, %v171_v56  ;;  %v225_v31 = vadd.f32 %v3313_v39, %v169_v3  ;;  %v228_v32 = vadd.f32 %v3313_v39, %v172_v4  ;;  %977 = vmatpush.bf16.msrb.mxu3 %v2413_v23 }
  0x94   :  { %v2641_v38 = vor.u32 %v3012_v22, %v2638_v25  ;;  %v249_v45 = vadd.f32 %v3313_v39, %v193_v0  ;;  %v252_v48 = vadd.f32 %v3313_v39, %v196_v9  ;;  %928 = vmatpush.bf16.msrb.mxu2 %v2601_v59  ;;  %v2589_v51 = vor.u32 %v3001_v41, %v2588_v28 }
  0x95   :  { %v272_v57 = vmax.f32 %v224_v20, 0.0  ;;  %1025 = vmatpush.bf16.msrb.mxu0 %v2521_v24  ;;  %v275_v0 = vmax.f32 %v227_v8, 0.0  ;;  %v2401_v3 = vor.u32 %v2952_v52, %v2398_v53  ;;  %v2509_v4 = vor.u32 %v2979_v55, %v2506_v61  ;;  %v2614_v20 = vld [vmem:[#allocation2 + $0x1ec] sm:$0xf0]  ;;  %v2949_v61 = vld [vmem:[#allocation2 + $0x1c] sm:$0xf] }
  0x96   :  { %v273_v6 = vmax.f32 %v225_v31, 0.0  ;;  %v276_v7 = vmax.f32 %v228_v32, 0.0  ;;  %1072 = vmatpush.bf16.msrb.mxu1 %v2641_v38  ;;  %v2629_v9 = vor.u32 %v3009_v42, %v2626_v44  ;;  %v297_v13 = vmax.f32 %v249_v45, 0.0  ;;  %v3003_v44 = vld [vmem:[#allocation2 + $0x1cc] sm:$0xf] }
  0x97   :  { %v3399_v49 = vpop.permute.xlu0 %142  ;;  %978 = vmatpush.bf16.msrb.mxu3 %v2401_v3  ;;  %v274_v14 = vmax.f32 %v3380_v43, 0.0  ;;  %v177_v15 = vmul.f32 %v3299_v27, %v3304_v34  ;;  %v300_v16 = vmax.f32 %v252_v48, 0.0  ;;  %v277_v21 = vmax.f32 %v3387_v12, 0.0  ;;  %v2602_v45 = vld [vmem:[#allocation2 + $0x1d4] sm:$0xf0] }
  0x98   :  { %v98_v50 = vpop.permute.xlu1 %97  ;;  %v203_v56 = vmul.f32 %v3268_v54, %v3399_v49  ;;  %929 = vmatpush.bf16.msrb.mxu2 %v2589_v51  ;;  %v283_v8 = vmax.f32 %v3328_v47, 0.0  ;;  %v292_v23 = vmax.f32 %v3316_v40, 0.0  ;;  %v295_v24 = vmax.f32 %v3343_v11, 0.0  ;;  %v2386_v3 = vld [vmem:[#allocation2 + $0x24] sm:$0xf0] }
  0x99   :  { %v176_v63 = vmul.f32 %v3268_v54, %v98_v50  ;;  %1026 = vmatpush.bf16.msrb.mxu0 %v2509_v4  ;;  %v3415_v25 = vpack.c.bf16 %v275_v0, %v272_v57  ;;  %v3417_v28 = vpack.c.bf16 %v299_v60, %v296_v58  ;;  %v3419_v43 = vpack.c.bf16 %v276_v7, %v273_v6  ;;  %v2576_v58 = vld [vmem:[#allocation2 + $0x198] sm:$0xf]  ;;  %v2998_v60 = vld [vmem:[#allocation2 + $0x1a0] sm:$0xf0]  ;;  %v2976_v4 = vld [vmem:[#allocation2 + $0xf4] sm:$0xf] }
  0x9a   :  { %v3405_v5 = vadd.f32 %v3278_v62, %v203_v56  ;;  %1073 = vmatpush.bf16.msrb.mxu1 %v2629_v9  ;;  %v3421_v31 = vpack.c.bf16 %v277_v21, %v274_v14  ;;  %v2617_v12 = vor.u32 %v3006_v18, %v2614_v20  ;;  %v3429_v47 = vpack.c.bf16 %v295_v24, %v292_v23  ;;  %v2494_v6 = vld [vmem:[#allocation2 + $0xfc] sm:$0xf0]  ;;  %v3000_v14 = vld [vmem:[#allocation2 + $0x1b4] sm:$0xf]  ;;  %v2973_v23 = vld [vmem:[#allocation2 + $0xdc] sm:$0xf] }
  0x9b   :  { %v232_v59 = vadd.f32 %v3278_v62, %v176_v63  ;;  %v298_v40 = vmax.f32 %v3283_v1, 0.0  ;;  %v3435_v42 = vpack.c.bf16 %v300_v16, %v297_v13  ;;  %v198_v48 = vmul.f32 %v3299_v27, %v3292_v17  ;;  %v2590_v20 = vld [vmem:[#allocation2 + $0x1bc] sm:$0xf0]  ;;  %v2482_v24 = vld [vmem:[#allocation2 + $0xe4] sm:$0xf0] }
  0x9c   :  { %v3440_v51 = vadd.f32 %v3307_v35, %v177_v15  ;;  %v301_v1 = vmax.f32 %v3290_v10, 0.0  ;;  %v201_v53 = vmul.f32 %v3299_v27, %v3399_v49  ;;  %v174_v55 = vmul.f32 %v3299_v27, %v98_v50  ;;  %v2564_v21 = vld [vmem:[#allocation2 + $0x180] sm:$0xf] }
  0x9d   :  { %v280_v22 = vmax.f32 %v232_v59, 0.0  ;;  %v175_v56 = vmul.f32 %v3301_v30, %v98_v50  ;;  %v2577_v10 = vor.u32 %v2998_v60, %v2576_v58  ;;  %v2605_v0 = vor.u32 %v3003_v44, %v2602_v45  ;;  %v2997_v44 = vld [vmem:[#allocation2 + $0x19c] sm:$0xf]  ;;  %v2578_v45 = vld [vmem:[#allocation2 + $0x1a4] sm:$0xf0] }
  0x9e   :  { %1074 = vmatpush.bf16.msrb.mxu1 %v2617_v12  ;;  %v3458_v7 = vpack.c.bf16 %v301_v1, %v298_v40  ;;  %v199_v50 = vmul.f32 %v3301_v30, %v3292_v17  ;;  %v178_v9 = vmul.f32 %v3301_v30, %v3304_v34  ;;  %v202_v59 = vmul.f32 %v3301_v30, %v3399_v49  ;;  %v2995_v49 = vld [vmem:[#allocation2 + $0x188] sm:$0xf0]  ;;  %v2470_v58 = vld [vmem:[#allocation2 + $0xcc] sm:$0xf0] }
  0x9f   :  { %v3423_v32 = vpop.permute.xlu0 %147  ;;  %v3427_v41 = vpack.c.bf16 %v283_v8, %v280_v22  ;;  %v2389_v13 = vor.u32 %v2949_v61, %v2386_v3  ;;  %v286_v15 = vmax.f32 %v3353_v26, 0.0  ;;  %v281_v16 = vmax.f32 %v3440_v51, 0.0  ;;  %930 = vmatpush.bf16.msrb.mxu2 %v2577_v10  ;;  %v2946_v51 = vld [vmem:[#allocation2 + $0x4] sm:$0xf] }
  0xa0   :  { %v3425_v38 = vpop.permute.xlu1 %152  ;;  %v206_v11 = vmul.f32 %v3268_v54, %v3423_v32  ;;  %859 = vmatmul.bf16.gmra.mxu2 %v3417_v28  ;;  %908 = vmatmul.bf16.gmra.mxu3 %v3435_v42  ;;  %v2497_v18 = vor.u32 %v2976_v4, %v2494_v6  ;;  %v254_v22 = vadd.f32 %v3307_v35, %v198_v48  ;;  %v304_v10 = vmax.f32 %v3297_v19, 0.0  ;;  %v2566_v19 = vld [vmem:[#allocation2 + $0x18c] sm:$0xf0] }
  0xa1   :  { %839 = vmatmul.bf16.gmra.mxu0 %v3415_v25  ;;  %v209_v52 = vmul.f32 %v3268_v54, %v3425_v38  ;;  %888 = vmatmul.bf16.gmra.mxu1 %v3419_v43  ;;  %v257_v17 = vadd.f32 %v3307_v35, %v201_v53  ;;  %v230_v8 = vadd.f32 %v3307_v35, %v174_v55  ;;  %v2374_v55 = vld [vmem:[#allocation2 + $0xc] sm:$0xf0] }
  0xa2   :  { %v3452_v57 = vadd.f32 %v3278_v62, %v206_v11  ;;  %v231_v34 = vadd.f32 %v3313_v39, %v175_v56  ;;  %979 = vmatpush.bf16.msrb.mxu3 %v2389_v13  ;;  %1075 = vmatpush.bf16.msrb.mxu1 %v2605_v0  ;;  %v2593_v26 = vor.u32 %v3000_v14, %v2590_v20  ;;  %v2970_v56 = vld [vmem:[#allocation2 + $0xc4] sm:$0xf]  ;;  %v307_v0 = vmax.f32 %v3405_v5, 0.0 }
  0xa3   :  { %v3456_v63 = vadd.f32 %v3278_v62, %v209_v52  ;;  %1027 = vmatpush.bf16.msrb.mxu0 %v2497_v18  ;;  %v2565_v40 = vor.u32 %v2995_v49, %v2564_v21  ;;  %v2485_v11 = vor.u32 %v2973_v23, %v2482_v24  ;;  %v255_v48 = vadd.f32 %v3313_v39, %v199_v50  ;;  %v2994_v18 = vld [vmem:[#allocation2 + $0x184] sm:$0xf]  ;;  %v2969_v24 = vld [vmem:[#allocation2 + $0xb8] sm:$0xf0] }
  0xa4   :  { %v234_v52 = vadd.f32 %v3313_v39, %v178_v9  ;;  %v258_v1 = vadd.f32 %v3313_v39, %v202_v59  ;;  %v2377_v61 = vor.u32 %v2946_v51, %v2374_v55  ;;  %v278_v4 = vmax.f32 %v230_v8, 0.0  ;;  %v2993_v51 = vld [vmem:[#allocation2 + $0x178] sm:$0xf0] }
  0xa5   :  { %v313_v60 = vmax.f32 %v3456_v63, 0.0  ;;  %931 = vmatpush.bf16.msrb.mxu2 %v2565_v40  ;;  %v305_v6 = vmax.f32 %v257_v17, 0.0  ;;  %v279_v50 = vmax.f32 %v231_v34, 0.0  ;;  %v2581_v9 = vor.u32 %v2997_v44, %v2578_v45 }
  0xa6   :  { %1076 = vmatpush.bf16.msrb.mxu1 %v2593_v26  ;;  %v3480_v59 = vpack.c.bf16 %v307_v0, %v304_v10  ;;  %v310_v13 = vmax.f32 %v3452_v57, 0.0  ;;  %v306_v14 = vmax.f32 %v258_v1, 0.0  ;;  %980 = vmatpush.bf16.msrb.mxu3 %v2377_v61  ;;  %v302_v20 = vmax.f32 %v254_v22, 0.0  ;;  %v2464_v22 = vld [vmem:[#allocation2 + $0xb0] sm:$0xf] }
  0xa7   :  { %v113_v12 = vpop.permute.xlu0 %112  ;;  %1028 = vmatpush.bf16.msrb.mxu0 %v2485_v11  ;;  %v282_v5 = vmax.f32 %v234_v52, 0.0  ;;  %v303_v17 = vmax.f32 %v255_v48, 0.0  ;;  %v2569_v57 = vor.u32 %v2994_v18, %v2566_v19  ;;  %v2560_v26 = vld [vmem:[#allocation2 + $0x170] sm:$0xf]  ;;  %v204_v40 = vmul.f32 %v3299_v27, %v3423_v32  ;;  %v3017_v52 = vld [vmem:[#allocation2 + $0x238] sm:$0xf0] }
  0xa8   :  { %v185_v53 = vmul.f32 %v3268_v54, %v113_v12  ;;  %v2473_v54 = vor.u32 %v2970_v56, %v2470_v58  ;;  %v3483_v21 = vpack.c.bf16 %v313_v60, %v310_v13  ;;  %v3489_v34 = vpack.c.bf16 %v305_v6, %v302_v20  ;;  %v2656_v48 = vld [vmem:[#allocation2 + $0x230] sm:$0xf]  ;;  %v2966_v18 = vld [vmem:[#allocation2 + $0xa0] sm:$0xf0]  ;;  %v2548_v19 = vld [vmem:[#allocation2 + $0x158] sm:$0xf] }
  0xa9   :  { %v3491_v49 = vpack.c.bf16 %v282_v5, %v279_v50  ;;  %v3494_v23 = vpack.c.bf16 %v306_v14, %v303_v17  ;;  %v207_v11 = vmul.f32 %v3299_v27, %v3425_v38  ;;  %v184_v44 = vmul.f32 %v3301_v30, %v113_v12  ;;  %v2990_v5 = vld [vmem:[#allocation2 + $0x160] sm:$0xf0]  ;;  %v2644_v17 = vld [vmem:[#allocation2 + $0x218] sm:$0xf] }
  0xaa   :  { %v241_v3 = vadd.f32 %v3278_v62, %v185_v53  ;;  %4157 = vst [vmem:[#allocation8_spill] sm:$0xff] %v3483_v21  ;;  %v3485_v62 = vpack.c.bf16 %v281_v16, %v278_v4  ;;  %1077 = vmatpush.bf16.msrb.mxu1 %v2581_v9  ;;  %v180_v16 = vmul.f32 %v3299_v27, %v3336_v2 }
  0xab   :  { %1029 = vmatpush.bf16.msrb.mxu0 %v2473_v54  ;;  %v2465_v45 = vor.u32 %v2969_v24, %v2464_v22  ;;  %v205_v1 = vmul.f32 %v3301_v30, %v3423_v32  ;;  %v208_v53 = vmul.f32 %v3301_v30, %v3425_v38  ;;  %v2561_v55 = vor.u32 %v2993_v51, %v2560_v26  ;;  %v2440_v22 = vld [vmem:[#allocation2 + $0x80] sm:$0xf]  ;;  %v2963_v24 = vld [vmem:[#allocation2 + $0x88] sm:$0xf0]  ;;  %v2744_v26 = vld [vmem:[#allocation4 + $0xa8] sm:$0xf] }
  0xac   :  { %v289_v63 = vmax.f32 %v241_v3, 0.0  ;;  %v2657_v56 = vor.u32 %v3017_v52, %v2656_v48  ;;  %v181_v58 = vmul.f32 %v3301_v30, %v3336_v2  ;;  %v263_v60 = vadd.f32 %v3307_v35, %v207_v11  ;;  %v3040_v11 = vld [vmem:[#allocation4 + $0xb0] sm:$0xf0]  ;;  %v2632_v52 = vld [vmem:[#allocation2 + $0x200] sm:$0xf] }
  0xad   :  { %1120 = vmatpush.bf16.msra.mxu2 %v2465_v45  ;;  %1169 = vmatpush.bf16.msra.mxu3 %v2561_v55  ;;  %v240_v61 = vadd.f32 %v3313_v39, %v184_v44  ;;  %v236_v32 = vadd.f32 %v3307_v35, %v180_v16  ;;  %v261_v38 = vadd.f32 %v3313_v39, %v205_v1  ;;  %v2536_v44 = vld [vmem:[#allocation2 + $0x140] sm:$0xf]  ;;  %v2987_v45 = vld [vmem:[#allocation2 + $0x148] sm:$0xf0]  ;;  %v2428_v55 = vld [vmem:[#allocation2 + $0x68] sm:$0xf] }
  0xae   :  { %v3487_v8 = vpack.c.bf16 %v289_v63, %v286_v15  ;;  %v183_v15 = vmul.f32 %v3299_v27, %v113_v12  ;;  %1078 = vmatpush.bf16.msrb.mxu1 %v2569_v57  ;;  %v260_v12 = vadd.f32 %v3307_v35, %v204_v40  ;;  %v264_v10 = vadd.f32 %v3313_v39, %v208_v53  ;;  %v3014_v57 = vld [vmem:[#allocation2 + $0x220] sm:$0xf0]  ;;  %v3011_v1 = vld [vmem:[#allocation2 + $0x208] sm:$0xf0] }
  0xaf   :  { %1218 = vmatpush.bf16.msra.mxu0 %v2657_v56  ;;  %v237_v0 = vadd.f32 %v3313_v39, %v181_v58  ;;  %v311_v2 = vmax.f32 %v263_v60, 0.0  ;;  %v288_v3 = vmax.f32 %v240_v61, 0.0  ;;  %v284_v6 = vmax.f32 %v236_v32, 0.0  ;;  %v2452_v39 = vld [vmem:[#allocation2 + $0x98] sm:$0xf] }
  0xb0   :  { %864 = vmatmul.bf16.gmra.mxu2 %v3489_v34  ;;  %913 = vmatmul.bf16.gmra.mxu3 %v3494_v23  ;;  %v239_v27 = vadd.f32 %v3307_v35, %v183_v15  ;;  %v308_v4 = vmax.f32 %v260_v12, 0.0  ;;  %v312_v50 = vmax.f32 %v264_v10, 0.0  ;;  %v309_v9 = vmax.f32 %v261_v38, 0.0  ;;  %v2960_v56 = vld [vmem:[#allocation2 + $0x70] sm:$0xf0] }
  0xb1   :  { %844 = vmatmul.bf16.gmra.mxu0 %v3485_v62  ;;  %893 = vmatmul.bf16.gmra.mxu1 %v3491_v49  ;;  %v285_v54 = vmax.f32 %v237_v0, 0.0  ;;  %v2453_v20 = vor.u32 %v2966_v18, %v2452_v39  ;;  %v2549_v16 = vor.u32 %v2990_v5, %v2548_v19  ;;  %v2645_v15 = vor.u32 %v3014_v57, %v2644_v17  ;;  %v2732_v58 = vld [vmem:[#allocation4 + $0x90] sm:$0xf]  ;;  %v3037_v12 = vld [vmem:[#allocation4 + $0x98] sm:$0xf0] }
  0xb2   :  { %v287_v30 = vmax.f32 %v239_v27, 0.0  ;;  %v3523_v63 = vpack.c.bf16 %v311_v2, %v308_v4  ;;  %v3528_v35 = vpack.c.bf16 %v312_v50, %v309_v9  ;;  %v2441_v40 = vor.u32 %v2963_v24, %v2440_v22  ;;  %v2524_v60 = vld [vmem:[#allocation2 + $0x128] sm:$0xf]  ;;  %v2984_v61 = vld [vmem:[#allocation2 + $0x130] sm:$0xf0] }
  0xb3   :  { %v3525_v14 = vpack.c.bf16 %v288_v3, %v285_v54  ;;  %1121 = vmatpush.bf16.msra.mxu2 %v2453_v20  ;;  %1170 = vmatpush.bf16.msra.mxu3 %v2549_v16  ;;  %v2745_v51 = vor.u32 %v3040_v11, %v2744_v26  ;;  %v2537_v48 = vor.u32 %v2987_v45, %v2536_v44  ;;  %v2620_v10 = vld [vmem:[#allocation2 + $0x1e8] sm:$0xf]  ;;  %v3008_v0 = vld [vmem:[#allocation2 + $0x1f0] sm:$0xf0]  ;;  %v2416_v2 = vld [vmem:[#allocation2 + $0x50] sm:$0xf] }
  0xb4   :  { %v3521_v13 = vpack.c.bf16 %v287_v30, %v284_v6  ;;  %4158 = vst [vmem:[#allocation9_spill] sm:$0xff] %v3523_v63  ;;  %1219 = vmatpush.bf16.msra.mxu0 %v2645_v15  ;;  %v2633_v53 = vor.u32 %v3011_v1, %v2632_v52  ;;  %v2429_v27 = vor.u32 %v2960_v56, %v2428_v55  ;;  %v2957_v3 = vld [vmem:[#allocation2 + $0x58] sm:$0xf0]  ;;  %v2720_v4 = vld [vmem:[#allocation4 + $0x78] sm:$0xf] }
  0xb5   :  { %4159 = vst [vmem:[#allocation10_spill] sm:$0xff] %v3528_v35  ;;  %1827 = vmatpush.bf16.msra.mxu1 %v2745_v51  ;;  %v2733_v32 = vor.u32 %v3037_v12, %v2732_v58  ;;  %v2525_v38 = vor.u32 %v2984_v61, %v2524_v60  ;;  %v2621_v30 = vor.u32 %v3008_v0, %v2620_v10  ;;  %v3034_v50 = vld [vmem:[#allocation4 + $0x80] sm:$0xf0]  ;;  %v2512_v9 = vld [vmem:[#allocation2 + $0x110] sm:$0xf] }
  0xb6   :  { %v2417_v6 = vor.u32 %v2957_v3, %v2416_v2  ;;  %v2981_v54 = vld [vmem:[#allocation2 + $0x118] sm:$0xf0]  ;;  %v2721_v39 = vor.u32 %v3034_v50, %v2720_v4  ;;  %v2608_v19 = vld [vmem:[#allocation2 + $0x1d0] sm:$0xf]  ;;  %v2404_v17 = vld [vmem:[#allocation2 + $0x38] sm:$0xf] }
  0xb7   :  { %1122 = vmatpush.bf16.msra.mxu2 %v2441_v40  ;;  %1171 = vmatpush.bf16.msra.mxu3 %v2537_v48  ;;  %v2513_v18 = vor.u32 %v2981_v54, %v2512_v9  ;;  %v3005_v20 = vld [vmem:[#allocation2 + $0x1d8] sm:$0xf0]  ;;  %v2954_v57 = vld [vmem:[#allocation2 + $0x40] sm:$0xf0]  ;;  %v2708_v16 = vld [vmem:[#allocation4 + $0x60] sm:$0xf] }
  0xb8   :  { %1220 = vmatpush.bf16.msra.mxu0 %v2633_v53  ;;  %v2609_v5 = vor.u32 %v3005_v20, %v2608_v19  ;;  %v2405_v15 = vor.u32 %v2954_v57, %v2404_v17  ;;  %v3031_v22 = vld [vmem:[#allocation4 + $0x68] sm:$0xf0]  ;;  %v2500_v24 = vld [vmem:[#allocation2 + $0xf8] sm:$0xf]  ;;  %v2978_v26 = vld [vmem:[#allocation2 + $0x100] sm:$0xf0] }
  0xb9   :  { %1828 = vmatpush.bf16.msra.mxu1 %v2733_v32  ;;  %v2709_v40 = vor.u32 %v3031_v22, %v2708_v16  ;;  %v2501_v11 = vor.u32 %v2978_v26, %v2500_v24  ;;  %v2596_v44 = vld [vmem:[#allocation2 + $0x1b8] sm:$0xf]  ;;  %v3002_v45 = vld [vmem:[#allocation2 + $0x1c0] sm:$0xf0]  ;;  %v3554_v52 = vld [vmem:[%s4149_s4] sm:$0x7] }
  0xba   :  { %v2597_v51 = vor.u32 %v3002_v45, %v2596_v44  ;;  %4160 = vst [vmem:[#allocation11_spill] sm:$0xff] %v3554_v52  ;;  %v3560_v53 = vperm.slane %v3554_v52, 0  ;;  %v2392_v55 = vld [vmem:[#allocation2 + $0x20] sm:$0xf]  ;;  %v2951_v56 = vld [vmem:[#allocation2 + $0x28] sm:$0xf0] }
  0xbb   :  { %1123 = vmatpush.bf16.msra.mxu2 %v2429_v27  ;;  %1172 = vmatpush.bf16.msra.mxu3 %v2525_v38  ;;  %v2696_v58 = vld [vmem:[#allocation4 + $0x48] sm:$0xf]  ;;  %v2393_v27 = vor.u32 %v2951_v56, %v2392_v55  ;;  %v3028_v12 = vld [vmem:[#allocation4 + $0x50] sm:$0xf0]  ;;  %v2488_v60 = vld [vmem:[#allocation2 + $0xe0] sm:$0xf] }
  0xbc   :  { %1221 = vmatpush.bf16.msra.mxu0 %v2621_v30  ;;  %v2975_v61 = vld [vmem:[#allocation2 + $0xe8] sm:$0xf0]  ;;  %v2697_v38 = vor.u32 %v3028_v12, %v2696_v58  ;;  %v2380_v17 = vld [vmem:[#allocation2 + $0x8] sm:$0xf]  ;;  %v2948_v57 = vld [vmem:[#allocation2 + $0x10] sm:$0xf0] }
  0xbd   :  { %1829 = vmatpush.bf16.msra.mxu1 %v2721_v39  ;;  %v2489_v10 = vor.u32 %v2975_v61, %v2488_v60  ;;  %v2999_v50 = vld [vmem:[#allocation2 + $0x1a8] sm:$0xf0]  ;;  %v2684_v16 = vld [vmem:[#allocation4 + $0x30] sm:$0xf]  ;;  %v3025_v22 = vld [vmem:[#allocation4 + $0x38] sm:$0xf0] }
  0xbe   :  { %v2476_v24 = vld [vmem:[#allocation2 + $0xc8] sm:$0xf]  ;;  %v2972_v26 = vld [vmem:[#allocation2 + $0xd0] sm:$0xf0] }
  0xbf   :  { %1124 = vmatpush.bf16.msra.mxu2 %v2417_v6  ;;  %1173 = vmatpush.bf16.msra.mxu3 %v2513_v18  ;;  %v2584_v6 = vld [vmem:[#allocation2 + $0x1a0] sm:$0xf]  ;;  %v2477_v44 = vor.u32 %v2972_v26, %v2476_v24  ;;  %v2996_v12 = vld [vmem:[#allocation2 + $0x190] sm:$0xf0] }
  0xc0   :  { %869 = vmatmul.bf16.gmra.mxu2 %v3523_v63  ;;  %918 = vmatmul.bf16.gmra.mxu3 %v3528_v35  ;;  %v2585_v9 = vor.u32 %v2999_v50, %v2584_v6  ;;  %v2672_v6 = vld [vmem:[#allocation4 + $0x18] sm:$0xf]  ;;  %v3022_v50 = vld [vmem:[#allocation4 + $0x20] sm:$0xf0] }
  0xc1   :  { %849 = vmatmul.bf16.gmra.mxu0 %v3521_v13  ;;  %898 = vmatmul.bf16.gmra.mxu1 %v3525_v14 }
  0xc2   :  { %1222 = vmatpush.bf16.msra.mxu0 %v2609_v5  ;;  %1830 = vmatpush.bf16.msra.mxu1 %v2709_v40 }
  0xc3   :  { %1125 = vmatpush.bf16.msra.mxu2 %v2405_v15  ;;  %1174 = vmatpush.bf16.msra.mxu3 %v2501_v11  ;;  %v2381_v15 = vor.u32 %v2948_v57, %v2380_v17  ;;  %v2685_v11 = vor.u32 %v3025_v22, %v2684_v16 }
  0xc6   :  { %1223 = vmatpush.bf16.msra.mxu0 %v2597_v51  ;;  %1831 = vmatpush.bf16.msra.mxu1 %v2697_v38 }
  0xc7   :  { %1126 = vmatpush.bf16.msra.mxu2 %v2393_v27  ;;  %1175 = vmatpush.bf16.msra.mxu3 %v2489_v10  ;;  %v2572_v27 = vld [vmem:[#allocation2 + $0x188] sm:$0xf] }
  0xc8   :  { %v2573_v60 = vor.u32 %v2996_v12, %v2572_v27 }
  0xca   :  { %1224 = vmatpush.bf16.msra.mxu0 %v2585_v9  ;;  %1832 = vmatpush.bf16.msra.mxu1 %v2685_v11  ;;  %v2673_v9 = vor.u32 %v3022_v50, %v2672_v6  ;;  %v2936_v50 = vld [vmem:[#allocation4 + $0x228] sm:$0xf] }
  0xcb   :  { %1127 = vmatpush.bf16.msra.mxu2 %v2381_v15  ;;  %1176 = vmatpush.bf16.msra.mxu3 %v2477_v44 }
  0xce   :  { %1225 = vmatpush.bf16.msra.mxu0 %v2573_v60  ;;  %1833 = vmatpush.bf16.msra.mxu1 %v2673_v9  ;;  %v2660_v60 = vld [vmem:[#allocation4] sm:$0xf]  ;;  %v3088_v9 = vld [vmem:[#allocation4 + $0x230] sm:$0xf0] }
  0xd0   :  { %932 = vmatmul.bf16.vlgmr.msrb.gmra.mxu2 %v3393_v29  ;;  %981 = vmatmul.bf16.vlgmr.msrb.gmra.mxu3 %v3355_v33 }
  0xd1   :  { %1030 = vmatmul.bf16.vlgmr.msrb.gmra.mxu0 %v3363_v46  ;;  %1079 = vmatmul.bf16.vlgmr.msrb.gmra.mxu1 %v3393_v29 }
  0xe0   :  { %937 = vmatmul.bf16.gmra.mxu2 %v3421_v31  ;;  %986 = vmatmul.bf16.gmra.mxu3 %v3415_v25 }
  0xe1   :  { %1035 = vmatmul.bf16.gmra.mxu0 %v3419_v43  ;;  %1084 = vmatmul.bf16.gmra.mxu1 %v3421_v31 }
  0xf0   :  { %942 = vmatmul.bf16.gmra.mxu2 %v3427_v41  ;;  %991 = vmatmul.bf16.gmra.mxu3 %v3485_v62 }
  0xf1   :  { %1040 = vmatmul.bf16.gmra.mxu0 %v3491_v49  ;;  %1089 = vmatmul.bf16.gmra.mxu1 %v3427_v41 }
 0x100   :  { %947 = vmatmul.bf16.gmra.mxu2 %v3487_v8  ;;  %996 = vmatmul.bf16.gmra.mxu3 %v3521_v13 }
 0x101   :  { %1045 = vmatmul.bf16.gmra.mxu0 %v3525_v14  ;;  %1094 = vmatmul.bf16.gmra.mxu1 %v3487_v8 }
 0x10e   :  { %v3549_v48 = vpop.f32.mrf.mxu0  ;;  %v3556_v1 = vpop.f32.mrf.mxu1 }
 0x110   :  { %952 = vmatmul.bf16.gmra.mxu2 %v3429_v47  ;;  %1001 = vmatmul.bf16.gmra.mxu3 %v3357_v36 }
 0x111   :  { %1050 = vmatmul.bf16.gmra.mxu0 %v3359_v37  ;;  %1099 = vmatmul.bf16.gmra.mxu1 %v3429_v47 }
 0x113   :  { %v855_v32 = vpop.f32.mrf.mxu2  ;;  %v904_v30 = vpop.f32.mrf.mxu3 }
 0x114   :  { %v856_v0 = vadd.f32 %v855_v32, %v3560_v53 }
 0x116   :  { %v3566_v2 = vpop.f32.mrf.mxu0  ;;  %v3568_v3 = vpop.f32.mrf.mxu1  ;;  %v3570_v4 = vadd.f32 %v904_v30, %v856_v0 }
 0x11b   :  { %v857_v54 = vpop.f32.mrf.mxu2  ;;  %v906_v18 = vpop.f32.mrf.mxu3 }
 0x11c   :  { %v858_v39 = vadd.f32 %v857_v54, %v3560_v53 }
 0x11e   :  { %v3573_v19 = vpop.f32.mrf.mxu0  ;;  %v3575_v20 = vpop.f32.mrf.mxu1  ;;  %v3577_v5 = vadd.f32 %v906_v18, %v858_v39 }
 0x120   :  { %957 = vmatmul.bf16.gmra.mxu2 %v3458_v7  ;;  %1006 = vmatmul.bf16.gmra.mxu3 %v3417_v28 }
 0x121   :  { %1055 = vmatmul.bf16.gmra.mxu0 %v3435_v42  ;;  %1104 = vmatmul.bf16.gmra.mxu1 %v3458_v7 }
 0x123   :  { %v860_v40 = vpop.f32.mrf.mxu2  ;;  %v909_v51 = vpop.f32.mrf.mxu3 }
 0x124   :  { %v861_v45 = vadd.f32 %v860_v40, %v3560_v53 }
 0x126   :  { %v3584_v55 = vpop.f32.mrf.mxu0  ;;  %v3586_v56 = vpop.f32.mrf.mxu1  ;;  %v3588_v58 = vadd.f32 %v909_v51, %v861_v45 }
 0x12b   :  { %v862_v61 = vpop.f32.mrf.mxu2  ;;  %v911_v38 = vpop.f32.mrf.mxu3 }
 0x12c   :  { %v863_v32 = vadd.f32 %v862_v61, %v3560_v53  ;;  %v3019_v61 = vld [vmem:[#allocation4 + $0x8] sm:$0xf0] }
 0x12e   :  { %v3591_v10 = vpop.f32.mrf.mxu0  ;;  %v3593_v0 = vpop.f32.mrf.mxu1  ;;  %v3595_v30 = vadd.f32 %v911_v38, %v863_v32  ;;  %v2661_v38 = vor.u32 %v3019_v61, %v2660_v60  ;;  %v2746_v60 = vld [vmem:[#allocation4 + $0xb4] sm:$0xf0]  ;;  %v3063_v61 = vld [vmem:[#allocation4 + $0x16c] sm:$0xf] }
 0x130   :  { %962 = vmatmul.bf16.gmra.mxu2 %v3480_v59  ;;  %1011 = vmatmul.bf16.gmra.mxu3 %v3489_v34 }
 0x131   :  { %1060 = vmatmul.bf16.gmra.mxu0 %v3494_v23  ;;  %1109 = vmatmul.bf16.gmra.mxu1 %v3480_v59 }
 0x132   :  { %1834 = vmatpush.bf16.msra.mxu1 %v2661_v38 }
 0x133   :  { %v865_v54 = vpop.f32.mrf.mxu2  ;;  %v914_v18 = vpop.f32.mrf.mxu3 }
 0x134   :  { %v866_v39 = vadd.f32 %v865_v54, %v3560_v53  ;;  %v2840_v54 = vld [vmem:[#allocation4 + $0x168] sm:$0xf] }
 0x136   :  { %v3602_v17 = vpop.f32.mrf.mxu0  ;;  %v3604_v57 = vpop.f32.mrf.mxu1  ;;  %v3606_v16 = vadd.f32 %v914_v18, %v866_v39 }
 0x13b   :  { %v867_v15 = vpop.f32.mrf.mxu2  ;;  %v916_v24 = vpop.f32.mrf.mxu3 }
 0x13c   :  { %v868_v22 = vadd.f32 %v867_v15, %v3560_v53 }
 0x13e   :  { %v3609_v26 = vpop.f32.mrf.mxu0  ;;  %v3611_v40 = vpop.f32.mrf.mxu1  ;;  %v3613_v11 = vadd.f32 %v916_v24, %v868_v22  ;;  %v2937_v22 = vor.u32 %v3088_v9, %v2936_v50  ;;  %v3064_v24 = vld [vmem:[#allocation4 + $0x170] sm:$0xf0] }
 0x140   :  { %4161 = vst [vmem:[#allocation12_spill] sm:$0xff] %v3613_v11  ;;  %967 = vmatmul.bf16.gmra.mxu2 %v3483_v21  ;;  %1016 = vmatmul.bf16.gmra.mxu3 %v3523_v63 }
 0x141   :  { %1065 = vmatmul.bf16.gmra.mxu0 %v3528_v35  ;;  %1114 = vmatmul.bf16.gmra.mxu1 %v3483_v21  ;;  %v2841_v35 = vor.u32 %v3064_v24, %v2840_v54  ;;  %v836_v54 = vadd.f32 %v3549_v48, %v3560_v53  ;;  %v3085_v48 = vld [vmem:[#allocation4 + $0x218] sm:$0xf0] }
 0x142   :  { %1925 = vmatpush.bf16.msrb.mxu3 %v2937_v22  ;;  %v3061_v21 = vld [vmem:[#allocation4 + $0x158] sm:$0xf0] }
 0x143   :  { %v870_v44 = vpop.f32.mrf.mxu2  ;;  %v919_v51 = vpop.f32.mrf.mxu3  ;;  %1876 = vmatpush.bf16.msrb.mxu2 %v2841_v35  ;;  %v885_v22 = vadd.f32 %v3556_v1, %v836_v54  ;;  %v2734_v54 = vld [vmem:[#allocation4 + $0x9c] sm:$0xf0] }
 0x144   :  { %v871_v45 = vadd.f32 %v870_v44, %v3560_v53 }
 0x146   :  { %v3620_v27 = vpop.f32.mrf.mxu0  ;;  %v3622_v12 = vpop.f32.mrf.mxu1  ;;  %v3624_v32 = vadd.f32 %v919_v51, %v871_v45  ;;  %v3632_v45 = vperm.slane %v3554_v52, 1  ;;  %v3039_v51 = vld [vmem:[#allocation4 + $0xac] sm:$0xf] }
 0x147   :  { %v2749_v38 = vor.u32 %v3039_v51, %v2746_v60 }
 0x148   :  { %4162 = vst [vmem:[#allocation13_spill] sm:$0xff] %v3624_v32 }
 0x149   :  { %1974 = vmatpush.bf16.msrb.mxu0 %v2749_v38 }
 0x14b   :  { %v872_v6 = vpop.f32.mrf.mxu2  ;;  %v921_v18 = vpop.f32.mrf.mxu3 }
 0x14c   :  { %v873_v39 = vadd.f32 %v872_v6, %v3560_v53  ;;  %v2842_v6 = vld [vmem:[#allocation4 + $0x174] sm:$0xf0] }
 0x14d   :  { %v2845_v9 = vor.u32 %v3063_v61, %v2842_v6  ;;  %v2924_v6 = vld [vmem:[#allocation4 + $0x210] sm:$0xf] }
 0x14e   :  { %v1031_v15 = vpop.f32.mrf.mxu0  ;;  %v1080_v44 = vpop.f32.mrf.mxu1  ;;  %v3627_v63 = vadd.f32 %v921_v18, %v873_v39  ;;  %v2925_v32 = vor.u32 %v3085_v48, %v2924_v6 }
 0x14f   :  { %2023 = vmatpush.bf16.msrb.mxu1 %v2845_v9 }
 0x150   :  { %4163 = vst [vmem:[#allocation14_spill] sm:$0xff] %v3627_v63  ;;  %1128 = vmatmul.bf16.vlgmr.msra.gmra.mxu2 %v3355_v33  ;;  %1177 = vmatmul.bf16.vlgmr.msra.gmra.mxu3 %v3363_v46  ;;  %v838_v46 = vadd.f32 %v3566_v2, %v3560_v53 }
 0x151   :  { %1226 = vmatmul.bf16.vlgmr.msra.gmra.mxu0 %v3393_v29  ;;  %1926 = vmatpush.bf16.msrb.mxu3 %v2925_v32 }
 0x152   :  { %v887_v51 = vadd.f32 %v3568_v3, %v838_v46  ;;  %v3060_v46 = vld [vmem:[#allocation4 + $0x154] sm:$0xf] }
 0x153   :  { %v933_v50 = vpop.f32.mrf.mxu2  ;;  %v982_v39 = vpop.f32.mrf.mxu3 }
 0x154   :  { %v983_v33 = vadd.f32 %v982_v39, %v3632_v45  ;;  %v934_v60 = vadd.f32 %v933_v50, %v885_v22  ;;  %v2828_v39 = vld [vmem:[#allocation4 + $0x150] sm:$0xf]  ;;  %v3036_v50 = vld [vmem:[#allocation4 + $0x94] sm:$0xf] }
 0x155   :  { %v2829_v2 = vor.u32 %v3061_v21, %v2828_v39  ;;  %v2737_v21 = vor.u32 %v3036_v50, %v2734_v54  ;;  %v2816_v50 = vld [vmem:[#allocation4 + $0x138] sm:$0xf]  ;;  %v3058_v54 = vld [vmem:[#allocation4 + $0x140] sm:$0xf0] }
 0x156   :  { %v1033_v29 = vpop.f32.mrf.mxu0  ;;  %v1082_v35 = vpop.f32.mrf.mxu1  ;;  %v1032_v18 = vadd.f32 %v1031_v15, %v983_v33  ;;  %v1267_v15 = vmax.f32 %v934_v60, 0.0  ;;  %v843_v60 = vadd.f32 %v3584_v55, %v3560_v53  ;;  %v2817_v55 = vor.u32 %v3058_v54, %v2816_v50 }
 0x157   :  { %1877 = vmatpush.bf16.msrb.mxu2 %v2829_v2  ;;  %1975 = vmatpush.bf16.msrb.mxu0 %v2737_v21  ;;  %v3082_v2 = vld [vmem:[#allocation4 + $0x200] sm:$0xf0] }
 0x158   :  { %v1081_v24 = vadd.f32 %v1080_v44, %v1032_v18  ;;  %v892_v48 = vadd.f32 %v3586_v56, %v843_v60 }
 0x15b   :  { %v935_v61 = vpop.f32.mrf.mxu2  ;;  %v984_v63 = vpop.f32.mrf.mxu3  ;;  %1878 = vmatpush.bf16.msrb.mxu2 %v2817_v55  ;;  %v2804_v55 = vld [vmem:[#allocation4 + $0x120] sm:$0xf] }
 0x15c   :  { %v936_v52 = vadd.f32 %v935_v61, %v887_v51  ;;  %v985_v9 = vadd.f32 %v984_v63, %v3632_v45  ;;  %v2830_v63 = vld [vmem:[#allocation4 + $0x15c] sm:$0xf0] }
 0x15d   :  { %v2833_v18 = vor.u32 %v3060_v46, %v2830_v63 }
 0x15e   :  { %v1036_v38 = vpop.f32.mrf.mxu0  ;;  %v1085_v11 = vpop.f32.mrf.mxu1  ;;  %v1270_v33 = vmax.f32 %v936_v52, 0.0  ;;  %v1034_v1 = vadd.f32 %v1033_v29, %v985_v9  ;;  %v1268_v52 = vmax.f32 %v1081_v24, 0.0  ;;  %v2912_v9 = vld [vmem:[#allocation4 + $0x1f8] sm:$0xf] }
 0x15f   :  { %2024 = vmatpush.bf16.msrb.mxu1 %v2833_v18 }
 0x160   :  { %v3644_v3 = vpack.c.bf16 %v1270_v33, %v1267_v15  ;;  %1133 = vmatmul.bf16.gmra.mxu2 %v3415_v25  ;;  %v1083_v44 = vadd.f32 %v1082_v35, %v1034_v1  ;;  %1182 = vmatmul.bf16.gmra.mxu3 %v3419_v43 }
 0x161   :  { %1231 = vmatmul.bf16.gmra.mxu0 %v3421_v31  ;;  %v841_v31 = vadd.f32 %v3573_v19, %v3560_v53 }
 0x162   :  { %1835 = vmatmul.bf16.vlgmr.msra.gmra.mxu1 %v3644_v3  ;;  %v1271_v32 = vmax.f32 %v1083_v44, 0.0  ;;  %v2913_v44 = vor.u32 %v3082_v2, %v2912_v9 }
 0x163   :  { %v938_v29 = vpop.f32.mrf.mxu2  ;;  %v987_v22 = vpop.f32.mrf.mxu3  ;;  %v890_v24 = vadd.f32 %v3575_v20, %v841_v31  ;;  %v2818_v31 = vld [vmem:[#allocation4 + $0x144] sm:$0xf0] }
 0x164   :  { %v3651_v25 = vpack.c.bf16 %v1271_v32, %v1268_v52  ;;  %v988_v43 = vadd.f32 %v987_v22, %v3632_v45  ;;  %1927 = vmatpush.bf16.msrb.mxu3 %v2913_v44  ;;  %v3033_v52 = vld [vmem:[#allocation4 + $0x7c] sm:$0xf]  ;;  %v2722_v32 = vld [vmem:[#allocation4 + $0x84] sm:$0xf0] }
 0x165   :  { %v939_v39 = vadd.f32 %v938_v29, %v890_v24  ;;  %v3057_v29 = vld [vmem:[#allocation4 + $0x13c] sm:$0xf]  ;;  %v2725_v18 = vor.u32 %v3033_v52, %v2722_v32  ;;  %v3030_v52 = vld [vmem:[#allocation4 + $0x64] sm:$0xf]  ;;  %v2710_v32 = vld [vmem:[#allocation4 + $0x6c] sm:$0xf0] }
 0x166   :  { %v1038_v51 = vpop.f32.mrf.mxu0  ;;  %v1087_v35 = vpop.f32.mrf.mxu1  ;;  %v1037_v61 = vadd.f32 %v1036_v38, %v988_v43 }
 0x167   :  { %v1273_v38 = vmax.f32 %v939_v39, 0.0  ;;  %1976 = vmatpush.bf16.msrb.mxu0 %v2725_v18  ;;  %v2713_v18 = vor.u32 %v3030_v52, %v2710_v32 }
 0x168   :  { %v1086_v6 = vadd.f32 %v1085_v11, %v1037_v61 }
 0x16a   :  { %v1274_v22 = vmax.f32 %v1086_v6, 0.0 }
 0x16b   :  { %v940_v19 = vpop.f32.mrf.mxu2  ;;  %v989_v33 = vpop.f32.mrf.mxu3  ;;  %1977 = vmatpush.bf16.msrb.mxu0 %v2713_v18 }
 0x16c   :  { %v941_v15 = vadd.f32 %v940_v19, %v892_v48  ;;  %v990_v46 = vadd.f32 %v989_v33, %v3632_v45  ;;  %v848_v48 = vadd.f32 %v3602_v17, %v3560_v53  ;;  %v3079_v33 = vld [vmem:[#allocation4 + $0x1e8] sm:$0xf0] }
 0x16e   :  { %v1041_v1 = vpop.f32.mrf.mxu0  ;;  %v1090_v21 = vpop.f32.mrf.mxu1  ;;  %v1276_v63 = vmax.f32 %v941_v15, 0.0  ;;  %v1039_v20 = vadd.f32 %v1038_v51, %v990_v46  ;;  %v2821_v51 = vor.u32 %v3057_v29, %v2818_v31  ;;  %v897_v9 = vadd.f32 %v3604_v57, %v848_v48  ;;  %v2900_v15 = vld [vmem:[#allocation4 + $0x1e0] sm:$0xf]  ;;  %v3054_v29 = vld [vmem:[#allocation4 + $0x124] sm:$0xf] }
 0x16f   :  { %v2901_v46 = vor.u32 %v3079_v33, %v2900_v15  ;;  %v2806_v31 = vld [vmem:[#allocation4 + $0x12c] sm:$0xf0] }
 0x170   :  { %1138 = vmatmul.bf16.gmra.mxu2 %v3485_v62  ;;  %v3661_v56 = vpack.c.bf16 %v1276_v63, %v1273_v38  ;;  %v1088_v11 = vadd.f32 %v1087_v35, %v1039_v20  ;;  %1187 = vmatmul.bf16.gmra.mxu3 %v3491_v49  ;;  %v3055_v38 = vld [vmem:[#allocation4 + $0x128] sm:$0xf0] }
 0x171   :  { %1236 = vmatmul.bf16.gmra.mxu0 %v3427_v41  ;;  %v846_v41 = vadd.f32 %v3591_v10, %v3560_v53  ;;  %2025 = vmatpush.bf16.msrb.mxu1 %v2821_v51  ;;  %v2805_v17 = vor.u32 %v3055_v38, %v2804_v55  ;;  %v2809_v51 = vor.u32 %v3054_v29, %v2806_v31 }
 0x172   :  { %1840 = vmatmul.bf16.gmra.mxu1 %v3661_v56  ;;  %v1277_v60 = vmax.f32 %v1088_v11, 0.0  ;;  %1928 = vmatpush.bf16.msrb.mxu3 %v2901_v46  ;;  %v3052_v46 = vld [vmem:[#allocation4 + $0x110] sm:$0xf0] }
 0x173   :  { %v943_v43 = vpop.f32.mrf.mxu2  ;;  %v992_v62 = vpop.f32.mrf.mxu3  ;;  %v895_v6 = vadd.f32 %v3593_v0, %v846_v41  ;;  %1879 = vmatpush.bf16.msrb.mxu2 %v2805_v17  ;;  %v2698_v17 = vld [vmem:[#allocation4 + $0x54] sm:$0xf0] }
 0x174   :  { %v993_v35 = vadd.f32 %v992_v62, %v3632_v45  ;;  %v3668_v24 = vpack.c.bf16 %v1277_v60, %v1274_v22 }
 0x175   :  { %v944_v2 = vadd.f32 %v943_v43, %v895_v6  ;;  %2026 = vmatpush.bf16.msrb.mxu1 %v2809_v51 }
 0x176   :  { %v1043_v61 = vpop.f32.mrf.mxu0  ;;  %v1092_v49 = vpop.f32.mrf.mxu1  ;;  %v1042_v39 = vadd.f32 %v1041_v1, %v993_v35  ;;  %v853_v35 = vadd.f32 %v3620_v27, %v3560_v53 }
 0x177   :  { %v1279_v1 = vmax.f32 %v944_v2, 0.0  ;;  %v3076_v2 = vld [vmem:[#allocation4 + $0x1d0] sm:$0xf0] }
 0x178   :  { %v1091_v19 = vadd.f32 %v1090_v21, %v1042_v39  ;;  %v902_v6 = vadd.f32 %v3622_v12, %v853_v35 }
 0x17a   :  { %v1280_v22 = vmax.f32 %v1091_v19, 0.0 }
 0x17b   :  { %v945_v10 = vpop.f32.mrf.mxu2  ;;  %v994_v50 = vpop.f32.mrf.mxu3 }
 0x17c   :  { %v946_v44 = vadd.f32 %v945_v10, %v897_v9  ;;  %v995_v63 = vadd.f32 %v994_v50, %v3632_v45  ;;  %v2888_v9 = vld [vmem:[#allocation4 + $0x1c8] sm:$0xf] }
 0x17d   :  { %v2792_v50 = vld [vmem:[#allocation4 + $0x108] sm:$0xf] }
 0x17e   :  { %v1046_v54 = vpop.f32.mrf.mxu0  ;;  %v1095_v20 = vpop.f32.mrf.mxu1  ;;  %v1282_v11 = vmax.f32 %v946_v44, 0.0  ;;  %v1044_v0 = vadd.f32 %v1043_v61, %v995_v63  ;;  %v2889_v44 = vor.u32 %v3076_v2, %v2888_v9 }
 0x180   :  { %1143 = vmatmul.bf16.gmra.mxu2 %v3521_v13  ;;  %v3677_v57 = vpack.c.bf16 %v1282_v11, %v1279_v1  ;;  %v1093_v21 = vadd.f32 %v1092_v49, %v1044_v0  ;;  %1192 = vmatmul.bf16.gmra.mxu3 %v3525_v14  ;;  %v3051_v1 = vld [vmem:[#allocation4 + $0x10c] sm:$0xf]  ;;  %v2794_v0 = vld [vmem:[#allocation4 + $0x114] sm:$0xf0] }
 0x181   :  { %1241 = vmatmul.bf16.gmra.mxu0 %v3487_v8  ;;  %v851_v8 = vadd.f32 %v3609_v26, %v3560_v53  ;;  %v2793_v53 = vor.u32 %v3052_v46, %v2792_v50  ;;  %1929 = vmatpush.bf16.msrb.mxu3 %v2889_v44  ;;  %v2797_v32 = vor.u32 %v3051_v1, %v2794_v0  ;;  %v2782_v50 = vld [vmem:[#allocation4 + $0xfc] sm:$0xf0]  ;;  %v2864_v1 = vld [vmem:[#allocation4 + $0x198] sm:$0xf] }
 0x182   :  { %1845 = vmatmul.bf16.gmra.mxu1 %v3677_v57  ;;  %v1283_v60 = vmax.f32 %v1093_v21, 0.0 }
 0x183   :  { %v948_v43 = vpop.f32.mrf.mxu2  ;;  %v997_v13 = vpop.f32.mrf.mxu3  ;;  %v900_v48 = vadd.f32 %v3611_v40, %v851_v8  ;;  %1880 = vmatpush.bf16.msrb.mxu2 %v2793_v53  ;;  %2027 = vmatpush.bf16.msrb.mxu1 %v2797_v32  ;;  %v2876_v8 = vld [vmem:[#allocation4 + $0x1b0] sm:$0xf] }
 0x184   :  { %v998_v62 = vadd.f32 %v997_v13, %v3632_v45  ;;  %v3684_v61 = vpack.c.bf16 %v1283_v60, %v1280_v22  ;;  %v3073_v13 = vld [vmem:[#allocation4 + $0x1b8] sm:$0xf0] }
 0x185   :  { %v949_v19 = vadd.f32 %v948_v43, %v900_v48  ;;  %v2877_v35 = vor.u32 %v3073_v13, %v2876_v8  ;;  %v3049_v48 = vld [vmem:[#allocation4 + $0xf8] sm:$0xf0] }
 0x186   :  { %v1048_v41 = vpop.f32.mrf.mxu0  ;;  %v1097_v14 = vpop.f32.mrf.mxu1  ;;  %v1047_v49 = vadd.f32 %v1046_v54, %v998_v62 }
 0x187   :  { %v1285_v27 = vmax.f32 %v949_v19, 0.0  ;;  %1930 = vmatpush.bf16.msrb.mxu3 %v2877_v35 }
 0x188   :  { %v1096_v39 = vadd.f32 %v1095_v20, %v1047_v49  ;;  %v3027_v20 = vld [vmem:[#allocation4 + $0x4c] sm:$0xf]  ;;  %v2780_v49 = vld [vmem:[#allocation4 + $0xf0] sm:$0xf] }
 0x189   :  { %v2701_v11 = vor.u32 %v3027_v20, %v2698_v17  ;;  %v2781_v19 = vor.u32 %v3049_v48, %v2780_v49  ;;  %v2662_v49 = vld [vmem:[#allocation4 + $0xc] sm:$0xf0]  ;;  %v3045_v48 = vld [vmem:[#allocation4 + $0xdc] sm:$0xf] }
 0x18a   :  { %v1286_v21 = vmax.f32 %v1096_v39, 0.0 }
 0x18b   :  { %v950_v26 = vpop.f32.mrf.mxu2  ;;  %v999_v15 = vpop.f32.mrf.mxu3  ;;  %1978 = vmatpush.bf16.msrb.mxu0 %v2701_v11  ;;  %1881 = vmatpush.bf16.msrb.mxu2 %v2781_v19  ;;  %v3070_v11 = vld [vmem:[#allocation4 + $0x1a0] sm:$0xf0] }
 0x18c   :  { %v951_v10 = vadd.f32 %v950_v26, %v902_v6  ;;  %v1000_v55 = vadd.f32 %v999_v15, %v3632_v45  ;;  %v2686_v15 = vld [vmem:[#allocation4 + $0x3c] sm:$0xf0]  ;;  %v2865_v32 = vor.u32 %v3070_v11, %v2864_v1  ;;  %v4166_v1 = vld [vmem:[#allocation9_spill] sm:$0xff] }
 0x18e   :  { %v1051_v33 = vpop.f32.mrf.mxu0  ;;  %v1100_v38 = vpop.f32.mrf.mxu1  ;;  %v1288_v54 = vmax.f32 %v951_v10, 0.0  ;;  %v1049_v40 = vadd.f32 %v1048_v41, %v1000_v55  ;;  %v3024_v10 = vld [vmem:[#allocation4 + $0x34] sm:$0xf]  ;;  %1931 = vmatpush.bf16.msrb.mxu3 %v2865_v32 }
 0x18f   :  { %v2689_v44 = vor.u32 %v3024_v10, %v2686_v15 }
 0x190   :  { %1148 = vmatmul.bf16.gmra.mxu2 %v3357_v36  ;;  %v3693_v12 = vpack.c.bf16 %v1288_v54, %v1285_v27  ;;  %v1098_v63 = vadd.f32 %v1097_v14, %v1049_v40  ;;  %1197 = vmatmul.bf16.gmra.mxu3 %v3359_v37 }
 0x191   :  { %1246 = vmatmul.bf16.gmra.mxu0 %v3429_v47 }
 0x192   :  { %1850 = vmatmul.bf16.gmra.mxu1 %v3693_v12  ;;  %v1289_v29 = vmax.f32 %v1098_v63, 0.0  ;;  %1979 = vmatpush.bf16.msrb.mxu0 %v2689_v44  ;;  %v2852_v44 = vld [vmem:[#allocation4 + $0x180] sm:$0xf] }
 0x193   :  { %v953_v52 = vpop.f32.mrf.mxu2  ;;  %v1002_v47 = vpop.f32.mrf.mxu3 }
 0x194   :  { %v1003_v36 = vadd.f32 %v1002_v47, %v3632_v45  ;;  %v3698_v22 = vpack.c.bf16 %v1289_v29, %v1286_v21  ;;  %v954_v51 = vadd.f32 %v953_v52, %v3570_v4  ;;  %v2768_v29 = vld [vmem:[#allocation4 + $0xd8] sm:$0xf]  ;;  %v3046_v47 = vld [vmem:[#allocation4 + $0xe0] sm:$0xf0] }
 0x196   :  { %v1053_v18 = vpop.f32.mrf.mxu0  ;;  %v1102_v31 = vpop.f32.mrf.mxu1  ;;  %v1052_v37 = vadd.f32 %v1051_v33, %v1003_v36  ;;  %v1291_v26 = vmax.f32 %v954_v51, 0.0  ;;  %v3048_v33 = vld [vmem:[#allocation4 + $0xf4] sm:$0xf] }
 0x198   :  { %v1101_v43 = vadd.f32 %v1100_v38, %v1052_v37  ;;  %v2785_v38 = vor.u32 %v3048_v33, %v2782_v50  ;;  %v2674_v37 = vld [vmem:[#allocation4 + $0x24] sm:$0xf0]  ;;  %v3067_v50 = vld [vmem:[#allocation4 + $0x188] sm:$0xf0] }
 0x19a   :  { %v1292_v46 = vmax.f32 %v1101_v43, 0.0  ;;  %2028 = vmatpush.bf16.msrb.mxu1 %v2785_v38  ;;  %v2853_v38 = vor.u32 %v3067_v50, %v2852_v44  ;;  %v4170_v44 = vld [vmem:[#allocation11_spill] sm:$0xff] }
 0x19b   :  { %v955_v60 = vpop.f32.mrf.mxu2  ;;  %v1004_v62 = vpop.f32.mrf.mxu3  ;;  %v3744_v50 = vperm.slane %v4170_v44, 2  ;;  %v3081_v44 = vld [vmem:[#allocation4 + $0x1fc] sm:$0xf] }
 0x19c   :  { %v956_v41 = vadd.f32 %v955_v60, %v3577_v5  ;;  %v1005_v39 = vadd.f32 %v1004_v62, %v3632_v45  ;;  %v3043_v62 = vld [vmem:[#allocation4 + $0xc8] sm:$0xf0]  ;;  %1932 = vmatpush.bf16.msrb.mxu3 %v2853_v38 }
 0x19e   :  { %v1056_v14 = vpop.f32.mrf.mxu0  ;;  %v1105_v6 = vpop.f32.mrf.mxu1  ;;  %v1294_v9 = vmax.f32 %v956_v41, 0.0  ;;  %v1054_v2 = vadd.f32 %v1053_v18, %v1005_v39  ;;  %v3021_v18 = vld [vmem:[#allocation4 + $0x1c] sm:$0xf]  ;;  %v2756_v41 = vld [vmem:[#allocation4 + $0xc0] sm:$0xf] }
 0x19f   :  { %v2677_v60 = vor.u32 %v3021_v18, %v2674_v37  ;;  %v2757_v35 = vor.u32 %v3043_v62, %v2756_v41  ;;  %v2770_v39 = vld [vmem:[#allocation4 + $0xe4] sm:$0xf0]  ;;  %v3042_v18 = vld [vmem:[#allocation4 + $0xc4] sm:$0xf]  ;;  %v2752_v41 = vld [vmem:[#allocation4 + $0xb0] sm:$0xf] }
 0x1a0   :  { %1153 = vmatmul.bf16.gmra.mxu2 %v3417_v28  ;;  %v3705_v4 = vpack.c.bf16 %v1294_v9, %v1291_v26  ;;  %v1103_v5 = vadd.f32 %v1102_v31, %v1054_v2  ;;  %1202 = vmatmul.bf16.gmra.mxu3 %v3435_v42  ;;  %v2769_v31 = vor.u32 %v3046_v47, %v2768_v29  ;;  %v3041_v62 = vld [vmem:[#allocation4 + $0xb8] sm:$0xf0] }
 0x1a1   :  { %1251 = vmatmul.bf16.gmra.mxu0 %v3458_v7 }
 0x1a2   :  { %1855 = vmatmul.bf16.gmra.mxu1 %v3705_v4  ;;  %v1295_v53 = vmax.f32 %v1103_v5, 0.0  ;;  %1882 = vmatpush.bf16.msrb.mxu2 %v2769_v31 }
 0x1a3   :  { %v958_v55 = vpop.f32.mrf.mxu2  ;;  %v1007_v7 = vpop.f32.mrf.mxu3  ;;  %1980 = vmatpush.bf16.msrb.mxu0 %v2677_v60 }
 0x1a4   :  { %v1008_v28 = vadd.f32 %v1007_v7, %v3632_v45  ;;  %v3710_v54 = vpack.c.bf16 %v1295_v53, %v1292_v46  ;;  %v959_v20 = vadd.f32 %v958_v55, %v3588_v58  ;;  %v4164_v53 = vld [vmem:[#allocation12_spill] sm:$0xff] }
 0x1a6   :  { %v1058_v27 = vpop.f32.mrf.mxu0  ;;  %v1057_v42 = vadd.f32 %v1056_v14, %v1008_v28  ;;  %v1107_v40 = vpop.f32.mrf.mxu1  ;;  %v1297_v43 = vmax.f32 %v959_v20, 0.0  ;;  %v3018_v14 = vld [vmem:[#allocation4 + $0x4] sm:$0xf]  ;;  %1883 = vmatpush.bf16.msrb.mxu2 %v2757_v35 }
 0x1a7   :  { %v2665_v19 = vor.u32 %v3018_v14, %v2662_v49  ;;  %v3087_v14 = vld [vmem:[#allocation4 + $0x22c] sm:$0xf]  ;;  %v2753_v49 = vor.u32 %v3041_v62, %v2752_v41  ;;  %v2836_v41 = vld [vmem:[#allocation4 + $0x158] sm:$0xf]  ;;  %v3062_v62 = vld [vmem:[#allocation4 + $0x160] sm:$0xf0] }
 0x1a8   :  { %v1106_v63 = vadd.f32 %v1105_v6, %v1057_v42 }
 0x1a9   :  { %1981 = vmatpush.bf16.msrb.mxu0 %v2665_v19  ;;  %2121 = vmatpush.bf16.msra.mxu3 %v2753_v49  ;;  %v2932_v49 = vld [vmem:[#allocation4 + $0x218] sm:$0xf] }
 0x1ab   :  { %v960_v17 = vpop.f32.mrf.mxu2  ;;  %v1009_v21 = vpop.f32.mrf.mxu3 }
 0x1ac   :  { %v961_v0 = vadd.f32 %v960_v17, %v3595_v30  ;;  %v1010_v36 = vadd.f32 %v1009_v21, %v3632_v45  ;;  %v4165_v17 = vld [vmem:[#allocation8_spill] sm:$0xff] }
 0x1ae   :  { %v1061_v52 = vpop.f32.mrf.mxu0  ;;  %v1300_v51 = vmax.f32 %v961_v0, 0.0  ;;  %v1059_v58 = vadd.f32 %v1058_v27, %v1010_v36  ;;  %v1110_v13 = vpop.f32.mrf.mxu1  ;;  %v4167_v0 = vld [vmem:[#allocation10_spill] sm:$0xff] }
 0x1af   :  { %v2758_v36 = vld [vmem:[#allocation4 + $0xcc] sm:$0xf0] }
 0x1b0   :  { %1158 = vmatmul.bf16.gmra.mxu2 %v3489_v34  ;;  %v3717_v30 = vpack.c.bf16 %v1300_v51, %v1297_v43  ;;  %v1108_v8 = vadd.f32 %v1107_v40, %v1059_v58  ;;  %1207 = vmatmul.bf16.gmra.mxu3 %v3494_v23  ;;  %v2773_v34 = vor.u32 %v3045_v48, %v2770_v39  ;;  %v2938_v48 = vld [vmem:[#allocation4 + $0x234] sm:$0xf0]  ;;  %v4169_v39 = vld [vmem:[#allocation14_spill] sm:$0xff] }
 0x1b1   :  { %1256 = vmatmul.bf16.gmra.mxu0 %v3480_v59  ;;  %v1298_v59 = vmax.f32 %v1106_v63, 0.0  ;;  %v2761_v37 = vor.u32 %v3042_v18, %v2758_v36 }
 0x1b2   :  { %1860 = vmatmul.bf16.gmra.mxu1 %v3717_v30  ;;  %v1301_v26 = vmax.f32 %v1108_v8, 0.0  ;;  %v4168_v8 = vld [vmem:[#allocation13_spill] sm:$0xff] }
 0x1b3   :  { %v963_v6 = vpop.f32.mrf.mxu2  ;;  %v1012_v9 = vpop.f32.mrf.mxu3  ;;  %2029 = vmatpush.bf16.msrb.mxu1 %v2773_v34  ;;  %v2941_v34 = vor.u32 %v3087_v14, %v2938_v48  ;;  %v3086_v48 = vld [vmem:[#allocation4 + $0x220] sm:$0xf0] }
 0x1b4   :  { %v1013_v5 = vadd.f32 %v1012_v9, %v3632_v45  ;;  %v3722_v23 = vpack.c.bf16 %v1301_v26, %v1298_v59  ;;  %v964_v33 = vadd.f32 %v963_v6, %v3606_v16 }
 0x1b5   :  { %2072 = vmatpush.bf16.msra.mxu2 %v2941_v34 }
 0x1b6   :  { %v1063_v2 = vpop.f32.mrf.mxu0  ;;  %v1062_v10 = vadd.f32 %v1061_v52, %v1013_v5  ;;  %v1112_v46 = vpop.f32.mrf.mxu1  ;;  %v1303_v40 = vmax.f32 %v964_v33, 0.0 }
 0x1b7   :  { %2030 = vmatpush.bf16.msrb.mxu1 %v2761_v37 }
 0x1b8   :  { %v1111_v15 = vadd.f32 %v1110_v13, %v1062_v10 }
 0x1ba   :  { %v1304_v21 = vmax.f32 %v1111_v15, 0.0 }
 0x1bb   :  { %v965_v55 = vpop.f32.mrf.mxu2  ;;  %v1014_v27 = vpop.f32.mrf.mxu3 }
 0x1bc   :  { %v966_v7 = vadd.f32 %v965_v55, %v4164_v53  ;;  %v1015_v42 = vadd.f32 %v1014_v27, %v3632_v45  ;;  %v2944_v55 = vld [vmem:[#allocation4 + $0x230] sm:$0xf]  ;;  %v3089_v27 = vld [vmem:[#allocation4 + $0x238] sm:$0xf0] }
 0x1be   :  { %v1066_v28 = vpop.f32.mrf.mxu0  ;;  %v1306_v63 = vmax.f32 %v966_v7, 0.0  ;;  %v1064_v20 = vadd.f32 %v1063_v2, %v1015_v42  ;;  %v1115_v51 = vpop.f32.mrf.mxu1 }
 0x1c0   :  { %1163 = vmatmul.bf16.gmra.mxu2 %v4166_v1  ;;  %v3729_v16 = vpack.c.bf16 %v1306_v63, %v1303_v40  ;;  %v1113_v11 = vadd.f32 %v1112_v46, %v1064_v20  ;;  %1212 = vmatmul.bf16.gmra.mxu3 %v4167_v0  ;;  %v2848_v46 = vld [vmem:[#allocation4 + $0x170] sm:$0xf]  ;;  %v2945_v63 = vor.u32 %v3089_v27, %v2944_v55  ;;  %v3038_v0 = vld [vmem:[#allocation4 + $0xa0] sm:$0xf0] }
 0x1c1   :  { %1261 = vmatmul.bf16.gmra.mxu0 %v4165_v17 }
 0x1c2   :  { %1865 = vmatmul.bf16.gmra.mxu1 %v3729_v16  ;;  %v1307_v32 = vmax.f32 %v1113_v11, 0.0  ;;  %v2740_v11 = vld [vmem:[#allocation4 + $0x98] sm:$0xf] }
 0x1c3   :  { %v968_v52 = vpop.f32.mrf.mxu2  ;;  %v1017_v29 = vpop.f32.mrf.mxu3  ;;  %2219 = vmatpush.bf16.msra.mxu1 %v2945_v63 }
 0x1c4   :  { %v1018_v31 = vadd.f32 %v1017_v29, %v3632_v45  ;;  %v3734_v43 = vpack.c.bf16 %v1307_v32, %v1304_v21  ;;  %v969_v13 = vadd.f32 %v968_v52, %v4168_v8  ;;  %v2741_v52 = vor.u32 %v3038_v0, %v2740_v11  ;;  %v3084_v32 = vld [vmem:[#allocation4 + $0x214] sm:$0xf]  ;;  %v2926_v29 = vld [vmem:[#allocation4 + $0x21c] sm:$0xf0] }
 0x1c6   :  { %v1068_v47 = vpop.f32.mrf.mxu0  ;;  %v1067_v60 = vadd.f32 %v1066_v28, %v1018_v31  ;;  %v1309_v9 = vmax.f32 %v969_v13, 0.0  ;;  %v1117_v10 = vpop.f32.mrf.mxu1  ;;  %v2929_v31 = vor.u32 %v3084_v32, %v2926_v29  ;;  %2122 = vmatpush.bf16.msra.mxu3 %v2741_v52  ;;  %v3083_v52 = vld [vmem:[#allocation4 + $0x208] sm:$0xf0] }
 0x1c8   :  { %v1116_v58 = vadd.f32 %v1115_v51, %v1067_v60  ;;  %2073 = vmatpush.bf16.msra.mxu2 %v2929_v31 }
 0x1ca   :  { %v1310_v38 = vmax.f32 %v1116_v58, 0.0 }
 0x1cb   :  { %v970_v35 = vpop.f32.mrf.mxu2  ;;  %v1019_v6 = vpop.f32.mrf.mxu3 }
 0x1cc   :  { %v971_v59 = vadd.f32 %v970_v35, %v4169_v39  ;;  %v1020_v26 = vadd.f32 %v1019_v6, %v3632_v45  ;;  %v3065_v45 = vld [vmem:[#allocation4 + $0x178] sm:$0xf0]  ;;  %v2837_v35 = vor.u32 %v3062_v62, %v2836_v41  ;;  %v3078_v41 = vld [vmem:[#allocation4 + $0x1e4] sm:$0xf]  ;;  %v2902_v62 = vld [vmem:[#allocation4 + $0x1ec] sm:$0xf0] }
 0x1cd   :  { %v2849_v7 = vor.u32 %v3065_v45, %v2848_v46  ;;  %v2914_v46 = vld [vmem:[#allocation4 + $0x204] sm:$0xf0] }
 0x1ce   :  { %v1227_v19 = vpop.f32.mrf.mxu0  ;;  %v1312_v2 = vmax.f32 %v971_v59, 0.0  ;;  %v1069_v5 = vadd.f32 %v1068_v47, %v1020_v26 }
 0x1cf   :  { %2170 = vmatpush.bf16.msra.mxu0 %v2849_v7 }
 0x1d0   :  { %1884 = vmatmul.bf16.vlgmr.msrb.gmra.mxu2 %v3651_v25  ;;  %v3741_v15 = vpack.c.bf16 %v1312_v2, %v1309_v9  ;;  %v1118_v33 = vadd.f32 %v1117_v10, %v1069_v5  ;;  %v2728_v2 = vld [vmem:[#allocation4 + $0x80] sm:$0xf]  ;;  %v3035_v5 = vld [vmem:[#allocation4 + $0x88] sm:$0xf0] }
 0x1d1   :  { %1982 = vmatmul.bf16.vlgmr.msrb.gmra.mxu0 %v3644_v3 }
 0x1d2   :  { %1870 = vmatmul.bf16.gmra.mxu1 %v3741_v15  ;;  %v1313_v28 = vmax.f32 %v1118_v33, 0.0  ;;  %v2729_v33 = vor.u32 %v3035_v5, %v2728_v2  ;;  %v2812_v5 = vld [vmem:[#allocation4 + $0x128] sm:$0xf] }
 0x1d3   :  { %v1129_v53 = vpop.f32.mrf.mxu2  ;;  %v1178_v42 = vpop.f32.mrf.mxu3  ;;  %2171 = vmatpush.bf16.msra.mxu0 %v2837_v35 }
 0x1d4   :  { %v3747_v20 = vpack.c.bf16 %v1313_v28, %v1310_v38  ;;  %v1130_v17 = vadd.f32 %v1129_v53, %v3744_v50  ;;  %v2917_v53 = vor.u32 %v3081_v44, %v2914_v46  ;;  %2123 = vmatpush.bf16.msra.mxu3 %v2729_v33  ;;  %v2908_v46 = vld [vmem:[#allocation4 + $0x1e8] sm:$0xf] }
 0x1d6   :  { %v1229_v40 = vpop.f32.mrf.mxu0  ;;  %v1179_v1 = vadd.f32 %v1178_v42, %v1130_v17  ;;  %2074 = vmatpush.bf16.msra.mxu2 %v2917_v53  ;;  %v2824_v17 = vld [vmem:[#allocation4 + $0x140] sm:$0xf] }
 0x1d8   :  { %v1228_v37 = vadd.f32 %v1227_v19, %v1179_v1  ;;  %v2933_v19 = vor.u32 %v3086_v48, %v2932_v49  ;;  %v3059_v1 = vld [vmem:[#allocation4 + $0x148] sm:$0xf0]  ;;  %v2905_v48 = vor.u32 %v3078_v41, %v2902_v62  ;;  %v2800_v41 = vld [vmem:[#allocation4 + $0x110] sm:$0xf]  ;;  %v3053_v62 = vld [vmem:[#allocation4 + $0x118] sm:$0xf0] }
 0x1d9   :  { %v2825_v0 = vor.u32 %v3059_v1, %v2824_v17  ;;  %v3029_v17 = vld [vmem:[#allocation4 + $0x58] sm:$0xf0] }
 0x1da   :  { %v1269_v8 = vmax.f32 %v1228_v37, 0.0  ;;  %2220 = vmatpush.bf16.msra.mxu1 %v2933_v19  ;;  %2075 = vmatpush.bf16.msra.mxu2 %v2905_v48  ;;  %v2896_v48 = vld [vmem:[#allocation4 + $0x1d0] sm:$0xf] }
 0x1db   :  { %v1131_v21 = vpop.f32.mrf.mxu2  ;;  %v1180_v18 = vpop.f32.mrf.mxu3  ;;  %2172 = vmatpush.bf16.msra.mxu0 %v2825_v0  ;;  %v3075_v0 = vld [vmem:[#allocation4 + $0x1cc] sm:$0xf] }
 0x1dc   :  { %v1132_v47 = vadd.f32 %v1131_v21, %v3744_v50  ;;  %v2920_v21 = vld [vmem:[#allocation4 + $0x200] sm:$0xf] }
 0x1de   :  { %v1232_v36 = vpop.f32.mrf.mxu0  ;;  %v1181_v51 = vadd.f32 %v1180_v18, %v1132_v47  ;;  %v2921_v18 = vor.u32 %v3083_v52, %v2920_v21  ;;  %v2890_v21 = vld [vmem:[#allocation4 + $0x1d4] sm:$0xf0] }
 0x1df   :  { %v3751_v60 = vpop.f32.mrf.mxu1 }
 0x1e0   :  { %v1230_v58 = vadd.f32 %v1229_v40, %v1181_v51  ;;  %1889 = vmatmul.bf16.gmra.mxu2 %v3668_v24  ;;  %2221 = vmatpush.bf16.msra.mxu1 %v2921_v18  ;;  %v2716_v51 = vld [vmem:[#allocation4 + $0x68] sm:$0xf]  ;;  %v2893_v18 = vor.u32 %v3075_v0, %v2890_v21 }
 0x1e1   :  { %1987 = vmatmul.bf16.gmra.mxu0 %v3661_v56 }
 0x1e2   :  { %v1272_v13 = vmax.f32 %v1230_v58, 0.0  ;;  %2031 = vmatmul.bf16.vlgmr.msrb.gmra.mxu1 %v3651_v25  ;;  %v3032_v58 = vld [vmem:[#allocation4 + $0x70] sm:$0xf0]  ;;  %2076 = vmatpush.bf16.msra.mxu2 %v2893_v18  ;;  %v3050_v18 = vld [vmem:[#allocation4 + $0x100] sm:$0xf0] }
 0x1e3   :  { %v1134_v14 = vpop.f32.mrf.mxu2  ;;  %v1183_v59 = vpop.f32.mrf.mxu3 }
 0x1e4   :  { %v3756_v39 = vpack.c.bf16 %v1272_v13, %v1269_v8  ;;  %v1135_v34 = vadd.f32 %v1134_v14, %v3744_v50  ;;  %v2717_v13 = vor.u32 %v3032_v58, %v2716_v51 }
 0x1e6   :  { %v1234_v6 = vpop.f32.mrf.mxu0  ;;  %1933 = vmatmul.bf16.vlgmr.msrb.gmra.mxu3 %v3756_v39  ;;  %v1184_v9 = vadd.f32 %v1183_v59, %v1135_v34 }
 0x1e7   :  { %v3760_v26 = vpop.f32.mrf.mxu1  ;;  %2124 = vmatpush.bf16.msra.mxu3 %v2717_v13 }
 0x1e8   :  { %v1233_v7 = vadd.f32 %v1232_v36, %v1184_v9 }
 0x1ea   :  { %v1275_v40 = vmax.f32 %v1233_v7, 0.0 }
 0x1eb   :  { %v1136_v10 = vpop.f32.mrf.mxu2  ;;  %v1185_v55 = vpop.f32.mrf.mxu3 }
 0x1ec   :  { %v1137_v45 = vadd.f32 %v1136_v10, %v3744_v50  ;;  %v3056_v10 = vld [vmem:[#allocation4 + $0x130] sm:$0xf0] }
 0x1ed   :  { %v2813_v44 = vor.u32 %v3056_v10, %v2812_v5 }
 0x1ee   :  { %v1237_v38 = vpop.f32.mrf.mxu0  ;;  %v1186_v27 = vadd.f32 %v1185_v55, %v1137_v45  ;;  %v3080_v45 = vld [vmem:[#allocation4 + $0x1f0] sm:$0xf0] }
 0x1ef   :  { %v3763_v28 = vpop.f32.mrf.mxu1  ;;  %v2909_v7 = vor.u32 %v3080_v45, %v2908_v46  ;;  %2173 = vmatpush.bf16.msra.mxu0 %v2813_v44  ;;  %v3026_v44 = vld [vmem:[#allocation4 + $0x40] sm:$0xf0] }
 0x1f0   :  { %v1235_v42 = vadd.f32 %v1234_v6, %v1186_v27  ;;  %1894 = vmatmul.bf16.gmra.mxu2 %v3684_v61 }
 0x1f1   :  { %1992 = vmatmul.bf16.gmra.mxu0 %v3677_v57  ;;  %2222 = vmatpush.bf16.msra.mxu1 %v2909_v7 }
 0x1f2   :  { %v1278_v63 = vmax.f32 %v1235_v42, 0.0  ;;  %2036 = vmatmul.bf16.gmra.mxu1 %v3668_v24 }
 0x1f3   :  { %v1139_v11 = vpop.f32.mrf.mxu2  ;;  %v1188_v32 = vpop.f32.mrf.mxu3 }
 0x1f4   :  { %v3768_v47 = vpack.c.bf16 %v1278_v63, %v1275_v40  ;;  %v1140_v36 = vadd.f32 %v1139_v11, %v3744_v50  ;;  %v2704_v63 = vld [vmem:[#allocation4 + $0x50] sm:$0xf] }
 0x1f5   :  { %v2705_v11 = vor.u32 %v3029_v17, %v2704_v63 }
 0x1f6   :  { %v1239_v29 = vpop.f32.mrf.mxu0  ;;  %1938 = vmatmul.bf16.gmra.mxu3 %v3768_v47  ;;  %v1189_v37 = vadd.f32 %v1188_v32, %v1140_v36 }
 0x1f7   :  { %v3772_v31 = vpop.f32.mrf.mxu1  ;;  %2125 = vmatpush.bf16.msra.mxu3 %v2705_v11 }
 0x1f8   :  { %v1238_v59 = vadd.f32 %v1237_v38, %v1189_v37 }
 0x1fa   :  { %v1281_v9 = vmax.f32 %v1238_v59, 0.0  ;;  %v3077_v59 = vld [vmem:[#allocation4 + $0x1d8] sm:$0xf0] }
 0x1fb   :  { %v1141_v8 = vpop.f32.mrf.mxu2  ;;  %v1190_v35 = vpop.f32.mrf.mxu3 }
 0x1fc   :  { %v1142_v14 = vadd.f32 %v1141_v8, %v3744_v50 }
 0x1fe   :  { %v1242_v49 = vpop.f32.mrf.mxu0  ;;  %v1191_v6 = vadd.f32 %v1190_v35, %v1142_v14  ;;  %v2801_v35 = vor.u32 %v3053_v62, %v2800_v41 }
 0x1ff   :  { %v3775_v19 = vpop.f32.mrf.mxu1 }
 0x200   :  { %v1240_v34 = vadd.f32 %v1239_v29, %v1191_v6  ;;  %1899 = vmatmul.bf16.gmra.mxu2 %v3698_v22  ;;  %2174 = vmatpush.bf16.msra.mxu0 %v2801_v35 }
 0x201   :  { %1997 = vmatmul.bf16.gmra.mxu0 %v3693_v12 }
 0x202   :  { %v1284_v2 = vmax.f32 %v1240_v34, 0.0  ;;  %2041 = vmatmul.bf16.gmra.mxu1 %v3684_v61 }
 0x203   :  { %v1144_v33 = vpop.f32.mrf.mxu2  ;;  %v1193_v55 = vpop.f32.mrf.mxu3 }
 0x204   :  { %v3780_v53 = vpack.c.bf16 %v1284_v2, %v1281_v9  ;;  %v1145_v27 = vadd.f32 %v1144_v33, %v3744_v50  ;;  %v2897_v9 = vor.u32 %v3077_v59, %v2896_v48  ;;  %v2692_v33 = vld [vmem:[#allocation4 + $0x38] sm:$0xf]  ;;  %v2680_v59 = vld [vmem:[#allocation4 + $0x20] sm:$0xf] }
 0x205   :  { %v2693_v45 = vor.u32 %v3026_v44, %v2692_v33  ;;  %v2776_v33 = vld [vmem:[#allocation4 + $0xe0] sm:$0xf] }
 0x206   :  { %v1244_v38 = vpop.f32.mrf.mxu0  ;;  %1943 = vmatmul.bf16.gmra.mxu3 %v3780_v53  ;;  %v1194_v40 = vadd.f32 %v1193_v55, %v1145_v27  ;;  %2223 = vmatpush.bf16.msra.mxu1 %v2897_v9  ;;  %v3072_v55 = vld [vmem:[#allocation4 + $0x1b4] sm:$0xf] }
 0x207   :  { %v3784_v42 = vpop.f32.mrf.mxu1  ;;  %2126 = vmatpush.bf16.msra.mxu3 %v2693_v45 }
 0x208   :  { %v1243_v36 = vadd.f32 %v1242_v49, %v1194_v40 }
 0x20a   :  { %v1287_v8 = vmax.f32 %v1243_v36, 0.0 }
 0x20b   :  { %v1146_v1 = vpop.f32.mrf.mxu2  ;;  %v1195_v32 = vpop.f32.mrf.mxu3 }
 0x20c   :  { %v1147_v52 = vadd.f32 %v1146_v1, %v3744_v50 }
 0x20e   :  { %v1247_v29 = vpop.f32.mrf.mxu0  ;;  %v1196_v37 = vadd.f32 %v1195_v32, %v1147_v52  ;;  %v2788_v32 = vld [vmem:[#allocation4 + $0xf8] sm:$0xf] }
 0x20f   :  { %v3787_v51 = vpop.f32.mrf.mxu1 }
 0x210   :  { %v1245_v58 = vadd.f32 %v1244_v38, %v1196_v37  ;;  %1904 = vmatmul.bf16.gmra.mxu2 %v3710_v54  ;;  %v2878_v38 = vld [vmem:[#allocation4 + $0x1bc] sm:$0xf0]  ;;  %v2789_v37 = vor.u32 %v3050_v18, %v2788_v32  ;;  %v2854_v32 = vld [vmem:[#allocation4 + $0x18c] sm:$0xf0] }
 0x211   :  { %2002 = vmatmul.bf16.gmra.mxu0 %v3705_v4  ;;  %v2881_v63 = vor.u32 %v3072_v55, %v2878_v38  ;;  %v3047_v38 = vld [vmem:[#allocation4 + $0xe8] sm:$0xf0] }
 0x212   :  { %v1290_v13 = vmax.f32 %v1245_v58, 0.0  ;;  %2046 = vmatmul.bf16.gmra.mxu1 %v3698_v22  ;;  %v2884_v58 = vld [vmem:[#allocation4 + $0x1b8] sm:$0xf]  ;;  %2175 = vmatpush.bf16.msra.mxu0 %v2789_v37  ;;  %v2764_v37 = vld [vmem:[#allocation4 + $0xc8] sm:$0xf] }
 0x213   :  { %v1149_v14 = vpop.f32.mrf.mxu2  ;;  %v1198_v49 = vpop.f32.mrf.mxu3  ;;  %2077 = vmatpush.bf16.msra.mxu2 %v2881_v63 }
 0x214   :  { %v3792_v34 = vpack.c.bf16 %v1290_v13, %v1287_v8  ;;  %v1150_v2 = vadd.f32 %v1149_v14, %v3744_v50  ;;  %v3074_v8 = vld [vmem:[#allocation4 + $0x1c0] sm:$0xf0] }
 0x215   :  { %v2885_v62 = vor.u32 %v3074_v8, %v2884_v58  ;;  %v2872_v58 = vld [vmem:[#allocation4 + $0x1a0] sm:$0xf] }
 0x216   :  { %v1249_v6 = vpop.f32.mrf.mxu0  ;;  %1948 = vmatmul.bf16.gmra.mxu3 %v3792_v34  ;;  %v1199_v10 = vadd.f32 %v1198_v49, %v1150_v2  ;;  %v3023_v49 = vld [vmem:[#allocation4 + $0x28] sm:$0xf0]  ;;  %v3069_v2 = vld [vmem:[#allocation4 + $0x19c] sm:$0xf] }
 0x217   :  { %v3796_v5 = vpop.f32.mrf.mxu1  ;;  %2224 = vmatpush.bf16.msra.mxu1 %v2885_v62  ;;  %v2681_v9 = vor.u32 %v3023_v49, %v2680_v59  ;;  %v2668_v49 = vld [vmem:[#allocation4 + $0x8] sm:$0xf] }
 0x218   :  { %v1248_v17 = vadd.f32 %v1247_v29, %v1199_v10  ;;  %v2866_v10 = vld [vmem:[#allocation4 + $0x1a4] sm:$0xf0] }
 0x219   :  { %v2869_v55 = vor.u32 %v3069_v2, %v2866_v10  ;;  %2127 = vmatpush.bf16.msra.mxu3 %v2681_v9 }
 0x21a   :  { %v1293_v21 = vmax.f32 %v1248_v17, 0.0 }
 0x21b   :  { %v1151_v46 = vpop.f32.mrf.mxu2  ;;  %v1200_v27 = vpop.f32.mrf.mxu3  ;;  %2078 = vmatpush.bf16.msra.mxu2 %v2869_v55 }
 0x21c   :  { %v1152_v7 = vadd.f32 %v1151_v46, %v3744_v50 }
 0x21e   :  { %v1252_v40 = vpop.f32.mrf.mxu0  ;;  %v1201_v1 = vadd.f32 %v1200_v27, %v1152_v7  ;;  %v2777_v7 = vor.u32 %v3047_v38, %v2776_v33 }
 0x21f   :  { %v3799_v11 = vpop.f32.mrf.mxu1 }
 0x220   :  { %v1250_v0 = vadd.f32 %v1249_v6, %v1201_v1  ;;  %1909 = vmatmul.bf16.gmra.mxu2 %v3722_v23  ;;  %2176 = vmatpush.bf16.msra.mxu0 %v2777_v7 }
 0x221   :  { %2007 = vmatmul.bf16.gmra.mxu0 %v3717_v30 }
 0x222   :  { %v1296_v52 = vmax.f32 %v1250_v0, 0.0  ;;  %2051 = vmatmul.bf16.gmra.mxu1 %v3710_v54 }
 0x223   :  { %v1154_v36 = vpop.f32.mrf.mxu2  ;;  %v1203_v29 = vpop.f32.mrf.mxu3 }
 0x224   :  { %v3804_v41 = vpack.c.bf16 %v1296_v52, %v1293_v21  ;;  %v1155_v14 = vadd.f32 %v1154_v36, %v3744_v50  ;;  %v3066_v52 = vld [vmem:[#allocation4 + $0x184] sm:$0xf] }
 0x225   :  { %v2857_v36 = vor.u32 %v3066_v52, %v2854_v32 }
 0x226   :  { %v1254_v13 = vpop.f32.mrf.mxu0  ;;  %1953 = vmatmul.bf16.gmra.mxu3 %v3804_v41  ;;  %v1204_v48 = vadd.f32 %v1203_v29, %v1155_v14 }
 0x227   :  { %v3808_v35 = vpop.f32.mrf.mxu1  ;;  %2079 = vmatpush.bf16.msra.mxu2 %v2857_v36 }
 0x228   :  { %v1253_v27 = vadd.f32 %v1252_v40, %v1204_v48  ;;  %v3044_v40 = vld [vmem:[#allocation4 + $0xd0] sm:$0xf0] }
 0x229   :  { %v2765_v14 = vor.u32 %v3044_v40, %v2764_v37 }
 0x22a   :  { %v1299_v0 = vmax.f32 %v1253_v27, 0.0 }
 0x22b   :  { %v1156_v6 = vpop.f32.mrf.mxu2  ;;  %v1205_v46 = vpop.f32.mrf.mxu3  ;;  %2177 = vmatpush.bf16.msra.mxu0 %v2765_v14 }
 0x22c   :  { %v1157_v44 = vadd.f32 %v1156_v6, %v3744_v50  ;;  %v3020_v6 = vld [vmem:[#allocation4 + $0x10] sm:$0xf0] }
 0x22d   :  { %v2669_v2 = vor.u32 %v3020_v6, %v2668_v49 }
 0x22e   :  { %v1257_v45 = vpop.f32.mrf.mxu0  ;;  %v1206_v63 = vadd.f32 %v1205_v46, %v1157_v44 }
 0x22f   :  { %v3811_v17 = vpop.f32.mrf.mxu1  ;;  %2128 = vmatpush.bf16.msra.mxu3 %v2669_v2 }
 0x230   :  { %v1255_v1 = vadd.f32 %v1254_v13, %v1206_v63  ;;  %1914 = vmatmul.bf16.gmra.mxu2 %v3734_v43  ;;  %v3071_v13 = vld [vmem:[#allocation4 + $0x1a8] sm:$0xf0] }
 0x231   :  { %2012 = vmatmul.bf16.gmra.mxu0 %v3729_v16  ;;  %v2873_v48 = vor.u32 %v3071_v13, %v2872_v58 }
 0x232   :  { %v1302_v21 = vmax.f32 %v1255_v1, 0.0  ;;  %2056 = vmatmul.bf16.gmra.mxu1 %v3722_v23  ;;  %v2860_v1 = vld [vmem:[#allocation4 + $0x188] sm:$0xf] }
 0x233   :  { %v1159_v18 = vpop.f32.mrf.mxu2  ;;  %v1208_v8 = vpop.f32.mrf.mxu3  ;;  %2225 = vmatpush.bf16.msra.mxu1 %v2873_v48 }
 0x234   :  { %v3816_v62 = vpack.c.bf16 %v1302_v21, %v1299_v0  ;;  %v1160_v59 = vadd.f32 %v1159_v18, %v3744_v50  ;;  %v3068_v0 = vld [vmem:[#allocation4 + $0x190] sm:$0xf0] }
 0x235   :  { %v2861_v21 = vor.u32 %v3068_v0, %v2860_v1 }
 0x236   :  { %v1259_v29 = vpop.f32.mrf.mxu0  ;;  %1958 = vmatmul.bf16.gmra.mxu3 %v3816_v62  ;;  %v1209_v10 = vadd.f32 %v1208_v8, %v1160_v59 }
 0x237   :  { %v3820_v9 = vpop.f32.mrf.mxu1  ;;  %2226 = vmatpush.bf16.msra.mxu1 %v2861_v21 }
 0x238   :  { %v1258_v38 = vadd.f32 %v1257_v45, %v1209_v10 }
 0x23a   :  { %v1305_v52 = vmax.f32 %v1258_v38, 0.0 }
 0x23b   :  { %v1161_v33 = vpop.f32.mrf.mxu2  ;;  %v1210_v46 = vpop.f32.mrf.mxu3 }
 0x23c   :  { %v1162_v44 = vadd.f32 %v1161_v33, %v3744_v50 }
 0x23e   :  { %v1262_v55 = vpop.f32.mrf.mxu0  ;;  %v1211_v7 = vadd.f32 %v1210_v46, %v1162_v44 }
 0x23f   :  { %v3823_v27 = vpop.f32.mrf.mxu1 }
 0x240   :  { %v1260_v63 = vadd.f32 %v1259_v29, %v1211_v7  ;;  %1919 = vmatmul.bf16.gmra.mxu2 %v3747_v20 }
 0x241   :  { %2017 = vmatmul.bf16.gmra.mxu0 %v3741_v15 }
 0x242   :  { %v1308_v32 = vmax.f32 %v1260_v63, 0.0  ;;  %2061 = vmatmul.bf16.gmra.mxu1 %v3734_v43 }
 0x243   :  { %v1164_v18 = vpop.f32.mrf.mxu2  ;;  %v1213_v36 = vpop.f32.mrf.mxu3 }
 0x244   :  { %v3828_v45 = vpack.c.bf16 %v1308_v32, %v1305_v52  ;;  %v1165_v40 = vadd.f32 %v1164_v18, %v3744_v50 }
 0x246   :  { %v1264_v37 = vpop.f32.mrf.mxu0  ;;  %1963 = vmatmul.bf16.gmra.mxu3 %v3828_v45  ;;  %v1214_v8 = vadd.f32 %v1213_v36, %v1165_v40 }
 0x247   :  { %v3832_v58 = vpop.f32.mrf.mxu1 }
 0x248   :  { %v1263_v59 = vadd.f32 %v1262_v55, %v1214_v8  ;;  %v3848_v55 = vld [vmem:[%s4151_s6] sm:$0x7] }
 0x249   :  { %v3859_v52 = vperm.slane %v3848_v55, 0 }
 0x24a   :  { %v1311_v10 = vmax.f32 %v1263_v59, 0.0 }
 0x24b   :  { %v1166_v29 = vpop.f32.mrf.mxu2  ;;  %v1215_v48 = vpop.f32.mrf.mxu3  ;;  %v1837_v36 = vadd.f32 %v3751_v60, %v3859_v52 }
 0x24c   :  { %v1167_v14 = vadd.f32 %v1166_v29, %v3744_v50 }
 0x24e   :  { %v1983_v13 = vpop.f32.mrf.mxu0  ;;  %v1216_v49 = vadd.f32 %v1215_v48, %v1167_v14 }
 0x24f   :  { %v3835_v6 = vpop.f32.mrf.mxu1 }
 0x250   :  { %v1265_v2 = vadd.f32 %v1264_v37, %v1216_v49  ;;  %2080 = vmatmul.bf16.vlgmr.msra.gmra.mxu2 %v3756_v39 }
 0x251   :  { %2178 = vmatmul.bf16.vlgmr.msra.gmra.mxu0 %v3651_v25  ;;  %v3851_v25 = vperm.slane %v3848_v55, 1 }
 0x252   :  { %v1314_v33 = vmax.f32 %v1265_v2, 0.0  ;;  %2066 = vmatmul.bf16.gmra.mxu1 %v3747_v20 }
 0x253   :  { %v1885_v44 = vpop.f32.mrf.mxu2  ;;  %v1984_v1 = vadd.f32 %v1983_v13, %v3851_v25 }
 0x254   :  { %v3840_v38 = vpack.c.bf16 %v1314_v33, %v1311_v10 }
 0x256   :  { %v1985_v46 = vpop.f32.mrf.mxu0  ;;  %1968 = vmatmul.bf16.gmra.mxu3 %v3840_v38 }
 0x257   :  { %v3843_v50 = vpop.f32.mrf.mxu1  ;;  %v1986_v37 = vadd.f32 %v1985_v46, %v3851_v25 }
 0x25b   :  { %v1887_v7 = vpop.f32.mrf.mxu2 }
 0x25e   :  { %v1988_v63 = vpop.f32.mrf.mxu0 }
 0x25f   :  { %v2032_v0 = vpop.f32.mrf.mxu1  ;;  %v1989_v49 = vadd.f32 %v1988_v63, %v3851_v25  ;;  %v1842_v63 = vadd.f32 %v3763_v28, %v3859_v52  ;;  %v1844_v28 = vadd.f32 %v3772_v31, %v3859_v52 }
 0x260   :  { %v3855_v21 = vadd.f32 %v2032_v0, %v1984_v1  ;;  %2085 = vmatmul.bf16.gmra.mxu2 %v3768_v47 }
 0x261   :  { %2183 = vmatmul.bf16.gmra.mxu0 %v3668_v24  ;;  %v1886_v24 = vadd.f32 %v1885_v44, %v1837_v36 }
 0x262   :  { %2227 = vmatmul.bf16.vlgmr.msra.gmra.mxu1 %v3756_v39  ;;  %v1839_v39 = vadd.f32 %v3760_v26, %v3859_v52 }
 0x263   :  { %v1890_v32 = vpop.f32.mrf.mxu2 }
 0x266   :  { %v1990_v18 = vpop.f32.mrf.mxu0  ;;  %2129 = vmatmul.bf16.vlgmr.msra.gmra.mxu3 %v3644_v3  ;;  %v1888_v3 = vadd.f32 %v1887_v7, %v1839_v39  ;;  %v1891_v7 = vadd.f32 %v1890_v32, %v1842_v63 }
 0x267   :  { %v2034_v40 = vpop.f32.mrf.mxu1  ;;  %v1991_v1 = vadd.f32 %v1990_v18, %v3851_v25 }
 0x268   :  { %v3866_v8 = vadd.f32 %v2034_v40, %v1986_v37 }
 0x269   :  { %v1934_v29 = vpop.f32.mrf.mxu3 }
 0x26a   :  { %v1935_v14 = vadd.f32 %v1934_v29, %v1886_v24 }
 0x26b   :  { %v1892_v13 = vpop.f32.mrf.mxu2 }
 0x26c   :  { %v2268_v48 = vmax.f32 %v1935_v14, 0.0 }
 0x26e   :  { %v1993_v59 = vpop.f32.mrf.mxu0  ;;  %2316 = vst [vmem:[%s4152_s7] sm:$0xff] %v2268_v48 }
 0x26f   :  { %v2037_v60 = vpop.f32.mrf.mxu1  ;;  %v1994_v18 = vadd.f32 %v1993_v59, %v3851_v25  ;;  %v1847_v59 = vadd.f32 %v3775_v19, %v3859_v52  ;;  %v1849_v19 = vadd.f32 %v3784_v42, %v3859_v52 }
 0x270   :  { %v3875_v2 = vadd.f32 %v2037_v60, %v1989_v49  ;;  %2090 = vmatmul.bf16.gmra.mxu2 %v3780_v53 }
 0x271   :  { %2188 = vmatmul.bf16.gmra.mxu0 %v3684_v61  ;;  %v1936_v10 = vpop.f32.mrf.mxu3 }
 0x272   :  { %v1937_v33 = vadd.f32 %v1936_v10, %v1888_v3  ;;  %2232 = vmatmul.bf16.gmra.mxu1 %v3768_v47 }
 0x273   :  { %v1895_v44 = vpop.f32.mrf.mxu2 }
 0x274   :  { %v2271_v26 = vmax.f32 %v1937_v33, 0.0 }
 0x276   :  { %v1995_v46 = vpop.f32.mrf.mxu0  ;;  %2319 = vst [vmem:[%s4152_s7 + $0x18] sm:$0xff] %v2271_v26  ;;  %2134 = vmatmul.bf16.gmra.mxu3 %v3661_v56  ;;  %v1893_v56 = vadd.f32 %v1892_v13, %v1844_v28  ;;  %v1896_v13 = vadd.f32 %v1895_v44, %v1847_v59 }
 0x277   :  { %v2039_v61 = vpop.f32.mrf.mxu1  ;;  %v1996_v60 = vadd.f32 %v1995_v46, %v3851_v25 }
 0x278   :  { %v3886_v0 = vadd.f32 %v2039_v61, %v1991_v1 }
 0x279   :  { %v1939_v36 = vpop.f32.mrf.mxu3 }
 0x27a   :  { %v1940_v47 = vadd.f32 %v1939_v36, %v1891_v7 }
 0x27b   :  { %v1897_v37 = vpop.f32.mrf.mxu2 }
 0x27c   :  { %v2274_v40 = vmax.f32 %v1940_v47, 0.0 }
 0x27e   :  { %v1998_v24 = vpop.f32.mrf.mxu0  ;;  %2322 = vst [vmem:[%s4152_s7 + $0x30] sm:$0xff] %v2274_v40  ;;  %v1852_v40 = vadd.f32 %v3787_v51, %v3859_v52  ;;  %v1854_v51 = vadd.f32 %v3796_v5, %v3859_v52 }
 0x27f   :  { %v2042_v29 = vpop.f32.mrf.mxu1  ;;  %v1999_v46 = vadd.f32 %v1998_v24, %v3851_v25 }
 0x280   :  { %v3895_v32 = vadd.f32 %v2042_v29, %v1994_v18  ;;  %2095 = vmatmul.bf16.gmra.mxu2 %v3792_v34 }
 0x281   :  { %2193 = vmatmul.bf16.gmra.mxu0 %v3698_v22  ;;  %v1941_v14 = vpop.f32.mrf.mxu3 }
 0x282   :  { %v1942_v48 = vadd.f32 %v1941_v14, %v1893_v56  ;;  %2237 = vmatmul.bf16.gmra.mxu1 %v3780_v53 }
 0x283   :  { %v1900_v39 = vpop.f32.mrf.mxu2 }
 0x284   :  { %v2277_v31 = vmax.f32 %v1942_v48, 0.0 }
 0x286   :  { %v2000_v49 = vpop.f32.mrf.mxu0  ;;  %2325 = vst [vmem:[%s4152_s7 + $0x48] sm:$0xff] %v2277_v31  ;;  %2139 = vmatmul.bf16.gmra.mxu3 %v3677_v57  ;;  %v1898_v57 = vadd.f32 %v1897_v37, %v1849_v19  ;;  %v1901_v37 = vadd.f32 %v1900_v39, %v1852_v40  ;;  %v1862_v40 = vadd.f32 %v3811_v17, %v3859_v52 }
 0x287   :  { %v2044_v22 = vpop.f32.mrf.mxu1  ;;  %v2001_v24 = vadd.f32 %v2000_v49, %v3851_v25  ;;  %v1864_v17 = vadd.f32 %v3820_v9, %v3859_v52 }
 0x288   :  { %v3906_v3 = vadd.f32 %v2044_v22, %v1996_v60 }
 0x289   :  { %v1944_v10 = vpop.f32.mrf.mxu3 }
 0x28a   :  { %v1945_v53 = vadd.f32 %v1944_v10, %v1896_v13  ;;  %v1857_v13 = vadd.f32 %v3799_v11, %v3859_v52  ;;  %v1859_v11 = vadd.f32 %v3808_v35, %v3859_v52 }
 0x28b   :  { %v1902_v33 = vpop.f32.mrf.mxu2 }
 0x28c   :  { %v2280_v26 = vmax.f32 %v1945_v53, 0.0 }
 0x28e   :  { %v2003_v63 = vpop.f32.mrf.mxu0  ;;  %2328 = vst [vmem:[%s4152_s7 + $0x60] sm:$0xff] %v2280_v26 }
 0x28f   :  { %v2047_v1 = vpop.f32.mrf.mxu1  ;;  %v2004_v48 = vadd.f32 %v2003_v63, %v3851_v25 }
 0x290   :  { %v3915_v44 = vadd.f32 %v2047_v1, %v1999_v46  ;;  %2100 = vmatmul.bf16.gmra.mxu2 %v3804_v41 }
 0x291   :  { %2198 = vmatmul.bf16.gmra.mxu0 %v3710_v54  ;;  %v1946_v61 = vpop.f32.mrf.mxu3 }
 0x292   :  { %v1947_v7 = vadd.f32 %v1946_v61, %v1898_v57  ;;  %2242 = vmatmul.bf16.gmra.mxu1 %v3792_v34 }
 0x293   :  { %v1905_v36 = vpop.f32.mrf.mxu2 }
 0x294   :  { %v2283_v42 = vmax.f32 %v1947_v7, 0.0  ;;  %v1906_v53 = vadd.f32 %v1905_v36, %v1857_v13 }
 0x296   :  { %v2005_v47 = vpop.f32.mrf.mxu0  ;;  %2331 = vst [vmem:[%s4152_s7 + $0x78] sm:$0xff] %v2283_v42  ;;  %2144 = vmatmul.bf16.gmra.mxu3 %v3693_v12  ;;  %v1903_v12 = vadd.f32 %v1902_v33, %v1854_v51 }
 0x297   :  { %v2049_v54 = vpop.f32.mrf.mxu1  ;;  %v2006_v10 = vadd.f32 %v2005_v47, %v3851_v25 }
 0x298   :  { %v3926_v28 = vadd.f32 %v2049_v54, %v2001_v24 }
 0x299   :  { %v1949_v18 = vpop.f32.mrf.mxu3 }
 0x29a   :  { %v1950_v34 = vadd.f32 %v1949_v18, %v1901_v37 }
 0x29b   :  { %v1907_v29 = vpop.f32.mrf.mxu2 }
 0x29c   :  { %v2286_v56 = vmax.f32 %v1950_v34, 0.0 }
 0x29e   :  { %v2008_v14 = vpop.f32.mrf.mxu0  ;;  %2334 = vst [vmem:[%s4152_s7 + $0x90] sm:$0xff] %v2286_v56 }
 0x29f   :  { %v2052_v31 = vpop.f32.mrf.mxu1  ;;  %v2009_v1 = vadd.f32 %v2008_v14, %v3851_v25 }
 0x2a0   :  { %v3935_v39 = vadd.f32 %v2052_v31, %v2004_v48  ;;  %2105 = vmatmul.bf16.gmra.mxu2 %v3816_v62 }
 0x2a1   :  { %2203 = vmatmul.bf16.gmra.mxu0 %v3722_v23  ;;  %v1951_v49 = vpop.f32.mrf.mxu3 }
 0x2a2   :  { %v1952_v59 = vadd.f32 %v1951_v49, %v1903_v12  ;;  %2247 = vmatmul.bf16.gmra.mxu1 %v3804_v41 }
 0x2a3   :  { %v1910_v60 = vpop.f32.mrf.mxu2 }
 0x2a4   :  { %v2289_v5 = vmax.f32 %v1952_v59, 0.0  ;;  %v1911_v54 = vadd.f32 %v1910_v60, %v1862_v40  ;;  %v1867_v60 = vadd.f32 %v3823_v27, %v3859_v52  ;;  %v1869_v27 = vadd.f32 %v3832_v58, %v3859_v52 }
 0x2a5   :  { %v1872_v58 = vadd.f32 %v3835_v6, %v3859_v52 }
 0x2a6   :  { %v2010_v22 = vpop.f32.mrf.mxu0  ;;  %2337 = vst [vmem:[%s4152_s7 + $0xa8] sm:$0xff] %v2289_v5  ;;  %2149 = vmatmul.bf16.gmra.mxu3 %v3705_v4  ;;  %v1908_v4 = vadd.f32 %v1907_v29, %v1859_v11 }
 0x2a7   :  { %v2054_v23 = vpop.f32.mrf.mxu1  ;;  %v2011_v24 = vadd.f32 %v2010_v22, %v3851_v25 }
 0x2a8   :  { %v3946_v33 = vadd.f32 %v2054_v23, %v2006_v10 }
 0x2a9   :  { %v1954_v26 = vpop.f32.mrf.mxu3 }
 0x2aa   :  { %v1955_v41 = vadd.f32 %v1954_v26, %v1906_v53 }
 0x2ab   :  { %v1912_v63 = vpop.f32.mrf.mxu2 }
 0x2ac   :  { %v2292_v19 = vmax.f32 %v1955_v41, 0.0 }
 0x2ae   :  { %v2013_v46 = vpop.f32.mrf.mxu0  ;;  %2340 = vst [vmem:[%s4152_s7 + $0xc0] sm:$0xff] %v2292_v19 }
 0x2af   :  { %v2057_v57 = vpop.f32.mrf.mxu1  ;;  %v2014_v14 = vadd.f32 %v2013_v46, %v3851_v25 }
 0x2b0   :  { %v3955_v61 = vadd.f32 %v2057_v57, %v2009_v1  ;;  %2110 = vmatmul.bf16.gmra.mxu2 %v3828_v45 }
 0x2b1   :  { %2208 = vmatmul.bf16.gmra.mxu0 %v3734_v43  ;;  %v1956_v7 = vpop.f32.mrf.mxu3 }
 0x2b2   :  { %v1957_v36 = vadd.f32 %v1956_v7, %v1908_v4  ;;  %2252 = vmatmul.bf16.gmra.mxu1 %v3816_v62 }
 0x2b3   :  { %v1915_v42 = vpop.f32.mrf.mxu2 }
 0x2b4   :  { %v2295_v35 = vmax.f32 %v1957_v36, 0.0  ;;  %v1916_v22 = vadd.f32 %v1915_v42, %v1867_v60 }
 0x2b6   :  { %v2015_v47 = vpop.f32.mrf.mxu0  ;;  %2343 = vst [vmem:[%s4152_s7 + $0xd8] sm:$0xff] %v2295_v35  ;;  %2154 = vmatmul.bf16.gmra.mxu3 %v3717_v30  ;;  %v1913_v30 = vadd.f32 %v1912_v63, %v1864_v17 }
 0x2b7   :  { %v2059_v43 = vpop.f32.mrf.mxu1  ;;  %v2016_v5 = vadd.f32 %v2015_v47, %v3851_v25 }
 0x2b8   :  { %v3966_v37 = vadd.f32 %v2059_v43, %v2011_v24  ;;  %v1874_v43 = vadd.f32 %v3843_v50, %v3859_v52  ;;  %v4024_v52 = vperm.slane %v3848_v55, 2 }
 0x2b9   :  { %v1959_v18 = vpop.f32.mrf.mxu3 }
 0x2ba   :  { %v1960_v62 = vadd.f32 %v1959_v18, %v1911_v54 }
 0x2bb   :  { %v1917_v34 = vpop.f32.mrf.mxu2 }
 0x2bc   :  { %v2298_v29 = vmax.f32 %v1960_v62, 0.0 }
 0x2be   :  { %v2018_v56 = vpop.f32.mrf.mxu0  ;;  %2346 = vst [vmem:[%s4152_s7 + $0xf0] sm:$0xff] %v2298_v29 }
 0x2bf   :  { %v2062_v51 = vpop.f32.mrf.mxu1  ;;  %v2019_v41 = vadd.f32 %v2018_v56, %v3851_v25 }
 0x2c0   :  { %v3975_v48 = vadd.f32 %v2062_v51, %v2014_v14  ;;  %2115 = vmatmul.bf16.gmra.mxu2 %v3840_v38 }
 0x2c1   :  { %2213 = vmatmul.bf16.gmra.mxu0 %v3747_v20  ;;  %v1961_v31 = vpop.f32.mrf.mxu3 }
 0x2c2   :  { %v1962_v12 = vadd.f32 %v1961_v31, %v1913_v30  ;;  %2257 = vmatmul.bf16.gmra.mxu1 %v3828_v45 }
 0x2c3   :  { %v1920_v49 = vpop.f32.mrf.mxu2 }
 0x2c4   :  { %v2301_v9 = vmax.f32 %v1962_v12, 0.0  ;;  %v1921_v47 = vadd.f32 %v1920_v49, %v1872_v58 }
 0x2c6   :  { %v2020_v59 = vpop.f32.mrf.mxu0  ;;  %2349 = vst [vmem:[%s4152_s7 + $0x108] sm:$0xff] %v2301_v9  ;;  %2159 = vmatmul.bf16.gmra.mxu3 %v3729_v16  ;;  %v1918_v16 = vadd.f32 %v1917_v34, %v1869_v27 }
 0x2c7   :  { %v2064_v20 = vpop.f32.mrf.mxu1  ;;  %v2021_v7 = vadd.f32 %v2020_v59, %v3851_v25 }
 0x2c8   :  { %v3986_v13 = vadd.f32 %v2064_v20, %v2016_v5 }
 0x2c9   :  { %v1964_v10 = vpop.f32.mrf.mxu3 }
 0x2ca   :  { %v1965_v45 = vadd.f32 %v1964_v10, %v1916_v22 }
 0x2cb   :  { %v1922_v23 = vpop.f32.mrf.mxu2 }
 0x2cc   :  { %v2304_v53 = vmax.f32 %v1965_v45, 0.0  ;;  %v1923_v18 = vadd.f32 %v1922_v23, %v1874_v43 }
 0x2ce   :  { %v2179_v26 = vpop.f32.mrf.mxu0  ;;  %2352 = vst [vmem:[%s4152_s7 + $0x120] sm:$0xff] %v2304_v53 }
 0x2cf   :  { %v2067_v63 = vpop.f32.mrf.mxu1 }
 0x2d0   :  { %v3994_v19 = vadd.f32 %v2067_v63, %v2019_v41 }
 0x2d1   :  { %v1966_v46 = vpop.f32.mrf.mxu3 }
 0x2d2   :  { %v1967_v11 = vadd.f32 %v1966_v46, %v1918_v16  ;;  %2262 = vmatmul.bf16.gmra.mxu1 %v3840_v38 }
 0x2d3   :  { %v2081_v1 = vpop.f32.mrf.mxu2 }
 0x2d4   :  { %v2307_v57 = vmax.f32 %v1967_v11, 0.0  ;;  %v2082_v4 = vadd.f32 %v2081_v1, %v3855_v21 }
 0x2d6   :  { %2355 = vst [vmem:[%s4152_s7 + $0x138] sm:$0xff] %v2307_v57  ;;  %v2269_v36 = vmax.f32 %v2082_v4, 0.0  ;;  %2164 = vmatmul.bf16.gmra.mxu3 %v3741_v15  ;;  %v2181_v42 = vpop.f32.mrf.mxu0 }
 0x2d7   :  { %v2069_v35 = vpop.f32.mrf.mxu1 }
 0x2d8   :  { %2317 = vst [vmem:[%s4152_s7 + $0x8] sm:$0xff] %v2269_v36  ;;  %v4008_v38 = vadd.f32 %v2069_v35, %v2021_v7 }
 0x2d9   :  { %v1969_v21 = vpop.f32.mrf.mxu3 }
 0x2da   :  { %v1970_v6 = vadd.f32 %v1969_v21, %v1921_v47 }
 0x2db   :  { %v2083_v40 = vpop.f32.mrf.mxu2 }
 0x2dc   :  { %v2310_v25 = vmax.f32 %v1970_v6, 0.0  ;;  %v2084_v24 = vadd.f32 %v2083_v40, %v3866_v8 }
 0x2de   :  { %2358 = vst [vmem:[%s4152_s7 + $0x150] sm:$0xff] %v2310_v25  ;;  %v2272_v15 = vmax.f32 %v2084_v24, 0.0  ;;  %v2184_v62 = vpop.f32.mrf.mxu0 }
 0x2df   :  { %v2228_v54 = vpop.f32.mrf.mxu1 }
 0x2e0   :  { %2320 = vst [vmem:[%s4152_s7 + $0x20] sm:$0xff] %v2272_v15 }
 0x2e1   :  { %v1971_v34 = vpop.f32.mrf.mxu3 }
 0x2e2   :  { %v1972_v29 = vadd.f32 %v1971_v34, %v1923_v18 }
 0x2e3   :  { %v2086_v56 = vpop.f32.mrf.mxu2 }
 0x2e4   :  { %v2313_v17 = vmax.f32 %v1972_v29, 0.0  ;;  %v2087_v8 = vadd.f32 %v2086_v56, %v3875_v2 }
 0x2e6   :  { %2361 = vst [vmem:[%s4152_s7 + $0x168] sm:$0xff] %v2313_v17  ;;  %v2275_v50 = vmax.f32 %v2087_v8, 0.0  ;;  %v2186_v31 = vpop.f32.mrf.mxu0 }
 0x2e7   :  { %v2230_v14 = vpop.f32.mrf.mxu1 }
 0x2e8   :  { %2323 = vst [vmem:[%s4152_s7 + $0x38] sm:$0xff] %v2275_v50 }
 0x2e9   :  { %v2130_v51 = vpop.f32.mrf.mxu3 }
 0x2ea   :  { %v2131_v30 = vadd.f32 %v2130_v51, %v4024_v52 }
 0x2eb   :  { %v2088_v12 = vpop.f32.mrf.mxu2 }
 0x2ec   :  { %v2180_v49 = vadd.f32 %v2179_v26, %v2131_v30  ;;  %v2089_v2 = vadd.f32 %v2088_v12, %v3886_v0 }
 0x2ee   :  { %v2229_v9 = vadd.f32 %v2228_v54, %v2180_v49  ;;  %v2278_v59 = vmax.f32 %v2089_v2, 0.0  ;;  %v2189_v0 = vpop.f32.mrf.mxu0 }
 0x2ef   :  { %v2233_v60 = vpop.f32.mrf.mxu1 }
 0x2f0   :  { %v2270_v5 = vmax.f32 %v2229_v9, 0.0  ;;  %2326 = vst [vmem:[%s4152_s7 + $0x50] sm:$0xff] %v2278_v59 }
 0x2f1   :  { %v2132_v55 = vpop.f32.mrf.mxu3 }
 0x2f2   :  { %2318 = vst [vmem:[%s4152_s7 + $0x10] sm:$0xff] %v2270_v5  ;;  %v2133_v20 = vadd.f32 %v2132_v55, %v4024_v52 }
 0x2f3   :  { %v2091_v22 = vpop.f32.mrf.mxu2 }
 0x2f4   :  { %v2182_v10 = vadd.f32 %v2181_v42, %v2133_v20  ;;  %v2092_v45 = vadd.f32 %v2091_v22, %v3895_v32 }
 0x2f6   :  { %v2231_v23 = vadd.f32 %v2230_v14, %v2182_v10  ;;  %v2281_v53 = vmax.f32 %v2092_v45, 0.0  ;;  %v2191_v57 = vpop.f32.mrf.mxu0 }
 0x2f7   :  { %v2235_v26 = vpop.f32.mrf.mxu1 }
 0x2f8   :  { %v2273_v27 = vmax.f32 %v2231_v23, 0.0  ;;  %2329 = vst [vmem:[%s4152_s7 + $0x68] sm:$0xff] %v2281_v53 }
 0x2f9   :  { %v2135_v41 = vpop.f32.mrf.mxu3 }
 0x2fa   :  { %2321 = vst [vmem:[%s4152_s7 + $0x28] sm:$0xff] %v2273_v27  ;;  %v2136_v63 = vadd.f32 %v2135_v41, %v4024_v52 }
 0x2fb   :  { %v2093_v16 = vpop.f32.mrf.mxu2 }
 0x2fc   :  { %v2185_v46 = vadd.f32 %v2184_v62, %v2136_v63  ;;  %v2094_v32 = vadd.f32 %v2093_v16, %v3906_v3 }
 0x2fe   :  { %v2234_v11 = vadd.f32 %v2233_v60, %v2185_v46  ;;  %v2284_v1 = vmax.f32 %v2094_v32, 0.0  ;;  %v2194_v25 = vpop.f32.mrf.mxu0 }
 0x2ff   :  { %v2238_v4 = vpop.f32.mrf.mxu1 }
 0x300   :  { %v2276_v58 = vmax.f32 %v2234_v11, 0.0  ;;  %2332 = vst [vmem:[%s4152_s7 + $0x80] sm:$0xff] %v2284_v1 }
 0x301   :  { %v2137_v7 = vpop.f32.mrf.mxu3 }
 0x302   :  { %2324 = vst [vmem:[%s4152_s7 + $0x40] sm:$0xff] %v2276_v58  ;;  %v2138_v36 = vadd.f32 %v2137_v7, %v4024_v52 }
 0x303   :  { %v2096_v42 = vpop.f32.mrf.mxu2 }
 0x304   :  { %v2187_v35 = vadd.f32 %v2186_v31, %v2138_v36  ;;  %v2097_v3 = vadd.f32 %v2096_v42, %v3915_v44 }
 0x306   :  { %v2236_v47 = vadd.f32 %v2235_v26, %v2187_v35  ;;  %v2287_v21 = vmax.f32 %v2097_v3, 0.0  ;;  %v2196_v8 = vpop.f32.mrf.mxu0 }
 0x307   :  { %v2240_v6 = vpop.f32.mrf.mxu1 }
 0x308   :  { %v2279_v40 = vmax.f32 %v2236_v47, 0.0  ;;  %2335 = vst [vmem:[%s4152_s7 + $0x98] sm:$0xff] %v2287_v21 }
 0x309   :  { %v2140_v24 = vpop.f32.mrf.mxu3 }
 0x30a   :  { %2327 = vst [vmem:[%s4152_s7 + $0x58] sm:$0xff] %v2279_v40  ;;  %v2141_v43 = vadd.f32 %v2140_v24, %v4024_v52 }
 0x30b   :  { %v2098_v15 = vpop.f32.mrf.mxu2 }
 0x30c   :  { %v2190_v54 = vadd.f32 %v2189_v0, %v2141_v43  ;;  %v2099_v44 = vadd.f32 %v2098_v15, %v3926_v28 }
 0x30e   :  { %v2239_v18 = vadd.f32 %v2238_v4, %v2190_v54  ;;  %v2290_v62 = vmax.f32 %v2099_v44, 0.0 }
 0x30f   :  { %v2243_v34 = vpop.f32.mrf.mxu1 }
 0x310   :  { %v2282_v29 = vmax.f32 %v2239_v18, 0.0  ;;  %2338 = vst [vmem:[%s4152_s7 + $0xb0] sm:$0xff] %v2290_v62 }
 0x311   :  { %v2142_v56 = vpop.f32.mrf.mxu3 }
 0x312   :  { %2330 = vst [vmem:[%s4152_s7 + $0x70] sm:$0xff] %v2282_v29  ;;  %v2143_v17 = vadd.f32 %v2142_v56, %v4024_v52 }
 0x313   :  { %v2101_v50 = vpop.f32.mrf.mxu2 }
 0x314   :  { %v2192_v14 = vadd.f32 %v2191_v57, %v2143_v17  ;;  %v2102_v28 = vadd.f32 %v2101_v50, %v3935_v39  ;;  %v2199_v39 = vpop.f32.mrf.mxu0 }
 0x316   :  { %v2241_v51 = vadd.f32 %v2240_v6, %v2192_v14  ;;  %v2293_v30 = vmax.f32 %v2102_v28, 0.0 }
 0x317   :  { %v2245_v31 = vpop.f32.mrf.mxu1 }
 0x318   :  { %v2285_v12 = vmax.f32 %v2241_v51, 0.0  ;;  %2341 = vst [vmem:[%s4152_s7 + $0xc8] sm:$0xff] %v2293_v30 }
 0x319   :  { %v2145_v49 = vpop.f32.mrf.mxu3 }
 0x31a   :  { %2333 = vst [vmem:[%s4152_s7 + $0x88] sm:$0xff] %v2285_v12  ;;  %v2146_v2 = vadd.f32 %v2145_v49, %v4024_v52 }
 0x31b   :  { %v2103_v9 = vpop.f32.mrf.mxu2 }
 0x31c   :  { %v2195_v59 = vadd.f32 %v2194_v25, %v2146_v2  ;;  %v2104_v60 = vadd.f32 %v2103_v9, %v3946_v33  ;;  %v2201_v27 = vpop.f32.mrf.mxu0 }
 0x31e   :  { %v2244_v5 = vadd.f32 %v2243_v34, %v2195_v59  ;;  %v2296_v55 = vmax.f32 %v2104_v60, 0.0 }
 0x31f   :  { %v2248_v20 = vpop.f32.mrf.mxu1 }
 0x320   :  { %v2288_v22 = vmax.f32 %v2244_v5, 0.0  ;;  %2344 = vst [vmem:[%s4152_s7 + $0xe0] sm:$0xff] %v2296_v55 }
 0x321   :  { %v2147_v10 = vpop.f32.mrf.mxu3 }
 0x322   :  { %2336 = vst [vmem:[%s4152_s7 + $0xa0] sm:$0xff] %v2288_v22  ;;  %v2148_v45 = vadd.f32 %v2147_v10, %v4024_v52 }
 0x323   :  { %v2106_v0 = vpop.f32.mrf.mxu2 }
 0x324   :  { %v2197_v23 = vadd.f32 %v2196_v8, %v2148_v45  ;;  %v2107_v33 = vadd.f32 %v2106_v0, %v3955_v61  ;;  %v2204_v58 = vpop.f32.mrf.mxu0 }
 0x326   :  { %v2246_v53 = vadd.f32 %v2245_v31, %v2197_v23  ;;  %v2299_v26 = vmax.f32 %v2107_v33, 0.0 }
 0x327   :  { %v2250_v63 = vpop.f32.mrf.mxu1 }
 0x328   :  { %v2291_v41 = vmax.f32 %v2246_v53, 0.0  ;;  %2347 = vst [vmem:[%s4152_s7 + $0xf8] sm:$0xff] %v2299_v26 }
 0x329   :  { %v2150_v16 = vpop.f32.mrf.mxu3 }
 0x32a   :  { %2339 = vst [vmem:[%s4152_s7 + $0xb8] sm:$0xff] %v2291_v41  ;;  %v2151_v46 = vadd.f32 %v2150_v16, %v4024_v52 }
 0x32b   :  { %v2108_v32 = vpop.f32.mrf.mxu2 }
 0x32c   :  { %v2200_v11 = vadd.f32 %v2199_v39, %v2151_v46  ;;  %v2109_v61 = vadd.f32 %v2108_v32, %v3966_v37  ;;  %v2206_v24 = vpop.f32.mrf.mxu0 }
 0x32e   :  { %v2249_v1 = vadd.f32 %v2248_v20, %v2200_v11  ;;  %v2302_v57 = vmax.f32 %v2109_v61, 0.0 }
 0x32f   :  { %v2253_v42 = vpop.f32.mrf.mxu1 }
 0x330   :  { %v2294_v4 = vmax.f32 %v2249_v1, 0.0  ;;  %2350 = vst [vmem:[%s4152_s7 + $0x110] sm:$0xff] %v2302_v57 }
 0x331   :  { %v2152_v7 = vpop.f32.mrf.mxu3 }
 0x332   :  { %2342 = vst [vmem:[%s4152_s7 + $0xd0] sm:$0xff] %v2294_v4  ;;  %v2153_v36 = vadd.f32 %v2152_v7, %v4024_v52 }
 0x333   :  { %v2111_v35 = vpop.f32.mrf.mxu2 }
 0x334   :  { %v2202_v3 = vadd.f32 %v2201_v27, %v2153_v36  ;;  %v2112_v37 = vadd.f32 %v2111_v35, %v3975_v48 }
 0x336   :  { %v2251_v47 = vadd.f32 %v2250_v63, %v2202_v3  ;;  %v2305_v21 = vmax.f32 %v2112_v37, 0.0 }
 0x337   :  { %v2255_v48 = vpop.f32.mrf.mxu1 }
 0x338   :  { %v2297_v6 = vmax.f32 %v2251_v47, 0.0  ;;  %2353 = vst [vmem:[%s4152_s7 + $0x128] sm:$0xff] %v2305_v21 }
 0x339   :  { %v2155_v40 = vpop.f32.mrf.mxu3 }
 0x33a   :  { %2345 = vst [vmem:[%s4152_s7 + $0xe8] sm:$0xff] %v2297_v6  ;;  %v2156_v25 = vadd.f32 %v2155_v40, %v4024_v52 }
 0x33b   :  { %v2113_v43 = vpop.f32.mrf.mxu2 }
 0x33c   :  { %v2205_v15 = vadd.f32 %v2204_v58, %v2156_v25  ;;  %v2114_v54 = vadd.f32 %v2113_v43, %v3986_v13  ;;  %v2209_v13 = vpop.f32.mrf.mxu0 }
 0x33e   :  { %v2254_v44 = vadd.f32 %v2253_v42, %v2205_v15  ;;  %v2308_v18 = vmax.f32 %v2114_v54, 0.0 }
 0x33f   :  { %v2258_v28 = vpop.f32.mrf.mxu1 }
 0x340   :  { %v2300_v62 = vmax.f32 %v2254_v44, 0.0  ;;  %2356 = vst [vmem:[%s4152_s7 + $0x140] sm:$0xff] %v2308_v18 }
 0x341   :  { %v2157_v34 = vpop.f32.mrf.mxu3 }
 0x342   :  { %2348 = vst [vmem:[%s4152_s7 + $0x100] sm:$0xff] %v2300_v62  ;;  %v2158_v29 = vadd.f32 %v2157_v34, %v4024_v52 }
 0x343   :  { %v2116_v56 = vpop.f32.mrf.mxu2 }
 0x344   :  { %v2207_v17 = vadd.f32 %v2206_v24, %v2158_v29  ;;  %v2117_v8 = vadd.f32 %v2116_v56, %v3994_v19  ;;  %v2211_v59 = vpop.f32.mrf.mxu0 }
 0x346   :  { %v2256_v50 = vadd.f32 %v2255_v48, %v2207_v17  ;;  %v2311_v14 = vmax.f32 %v2117_v8, 0.0 }
 0x347   :  { %v2260_v39 = vpop.f32.mrf.mxu1 }
 0x348   :  { %v2303_v51 = vmax.f32 %v2256_v50, 0.0  ;;  %2359 = vst [vmem:[%s4152_s7 + $0x158] sm:$0xff] %v2311_v14 }
 0x349   :  { %v2160_v30 = vpop.f32.mrf.mxu3 }
 0x34a   :  { %2351 = vst [vmem:[%s4152_s7 + $0x118] sm:$0xff] %v2303_v51  ;;  %v2161_v31 = vadd.f32 %v2160_v30, %v4024_v52 }
 0x34b   :  { %v2118_v12 = vpop.f32.mrf.mxu2 }
 0x34c   :  { %v2210_v49 = vadd.f32 %v2209_v13, %v2161_v31  ;;  %v2119_v19 = vadd.f32 %v2118_v12, %v4008_v38  ;;  %v2214_v38 = vpop.f32.mrf.mxu0 }
 0x34e   :  { %v2259_v2 = vadd.f32 %v2258_v28, %v2210_v49  ;;  %v2314_v9 = vmax.f32 %v2119_v19, 0.0 }
 0x34f   :  { %v2263_v23 = vpop.f32.mrf.mxu1 }
 0x350   :  { %v2306_v60 = vmax.f32 %v2259_v2, 0.0  ;;  %2362 = vst [vmem:[%s4152_s7 + $0x170] sm:$0xff] %v2314_v9 }
 0x351   :  { %v2162_v5 = vpop.f32.mrf.mxu3 }
 0x352   :  { %2354 = vst [vmem:[%s4152_s7 + $0x130] sm:$0xff] %v2306_v60  ;;  %v2163_v55 = vadd.f32 %v2162_v5, %v4024_v52 }
 0x354   :  { %v2212_v20 = vadd.f32 %v2211_v59, %v2163_v55  ;;  %v2216_v63 = vpop.f32.mrf.mxu0 }
 0x356   :  { %v2261_v22 = vadd.f32 %v2260_v39, %v2212_v20 }
 0x357   :  { %v2265_v46 = vpop.f32.mrf.mxu1 }
 0x358   :  { %v2309_v10 = vmax.f32 %v2261_v22, 0.0 }
 0x359   :  { %v2165_v45 = vpop.f32.mrf.mxu3 }
 0x35a   :  { %2357 = vst [vmem:[%s4152_s7 + $0x148] sm:$0xff] %v2309_v10  ;;  %v2166_v0 = vadd.f32 %v2165_v45, %v4024_v52 }
 0x35c   :  { %v2215_v33 = vadd.f32 %v2214_v38, %v2166_v0 }
 0x35e   :  { %v2264_v53 = vadd.f32 %v2263_v23, %v2215_v33 }
 0x360   :  { %v2312_v26 = vmax.f32 %v2264_v53, 0.0 }
 0x361   :  { %v2167_v27 = vpop.f32.mrf.mxu3 }
 0x362   :  { %2360 = vst [vmem:[%s4152_s7 + $0x160] sm:$0xff] %v2312_v26  ;;  %v2168_v41 = vadd.f32 %v2167_v27, %v4024_v52 }
 0x364   :  { %v2217_v16 = vadd.f32 %v2216_v63, %v2168_v41 }
 0x366   :  { %v2266_v32 = vadd.f32 %v2265_v46, %v2217_v16 }
 0x368   :  { %v2315_v11 = vmax.f32 %v2266_v32, 0.0 }
 0x36a   :  { %2363 = vst [vmem:[%s4152_s7 + $0x178] sm:$0xff] %v2315_v11 }
 0x36b   :  { %2368 = vsyncpa [#allocation3], 1 }
 0x36c   :  { %2369 = vsyncpa [#allocation5], 1 }

</bundles_post_ra>
